<compile_context>
chip_gen: v6e
topology: v6e:2x2x1
jax: 0.10.0
libtpu: 0.0.40
codegen_flags: <defaults>
</compile_context>

<pallas_src>
import numpy as np
import jax
import jax.numpy as jnp
from jax import lax
from jax.experimental import pallas as pl
from jax.experimental.pallas import tpu as pltpu

# ---- hyperparameters implied by the module ----
N_CLASSES = 10
N_CLASSES_PAD = 16                               # label-table rows padded for layout
CHANNELS = 1
IMG_SIZE = 16
HIDDEN = 512
IMG_SHAPE = (CHANNELS, IMG_SIZE, IMG_SIZE)
IMG_FEATURES = int(np.prod(IMG_SHAPE))           # 256 -> MXU-friendly K
IN_FEATURES = N_CLASSES + IMG_FEATURES           # 266 (torch concat width)
MIN_TILE_B = 16                                  # bf16 sublane-packing minimum


def _leaky_relu(x, slope=0.2):
    # max(x, 0.2*x): 2 VALU ops instead of cmp+mul+select.
    return jnp.maximum(x, slope * x)


def _round_up(x, m):
    return ((x + m - 1) // m) * m


def _elementwise_dtype_for_backend():
    """bf16 elementwise on v6e/v7x (packed VALU); f32 on v5e (no bf16 VPU)."""
    try:
        kind = jax.devices()[0].device_kind.lower()
    except Exception:
        return jnp.bfloat16
    if "v5 lite" in kind or "v5e" in kind or "v5lite" in kind:
        return jnp.float32
    return jnp.bfloat16


def discriminator_kernel(x_ref, lbl_ref, tbl_ref, w1_ref, w2_ref, b2_ref,
                         w3_ref, b3_ref, w4_ref, out_ref):
    """266 -> 512 -> 512 -> 512 -> 1 MLP, LeakyReLU(0.2), eval-mode dropout.

    Layer 1 is algebraically split:
      h1 = img_flat(256) @ w1[:256] + one_hot(labels) @ (embedding @ w1[256:] + b1)
    so the big matmul has K=256 and the label path is an in-register one-hot times a
    VMEM-resident (16, 512) table. Matmul operands are bf16 with f32 accumulation;
    the elementwise chain runs in b2_ref.dtype (bf16 on v6e/v7x, f32 on v5e).
    """
    cdt = b2_ref.dtype
    tb = x_ref.shape[0]
    n_cls = tbl_ref.shape[0]

    # --- Layer 1 ---
    # One-hot from int32 labels (exact 0/1 -> the K=16 matmul selects table rows exactly).
    classes = lax.broadcasted_iota(jnp.int32, (tb, n_cls), 1)
    one_hot = jnp.where(lbl_ref[...] == classes, 1.0, 0.0).astype(jnp.bfloat16)
    lab = jnp.dot(one_hot, tbl_ref[...], preferred_element_type=jnp.float32)  # incl. b1
    h = jnp.dot(x_ref[...], w1_ref[...], preferred_element_type=jnp.float32) + lab
    h = _leaky_relu(h.astype(cdt))

    # --- Layer 2 (Dropout(0.4) == identity in eval mode) ---
    h = jnp.dot(h.astype(jnp.bfloat16), w2_ref[...],
                preferred_element_type=jnp.float32)
    h = _leaky_relu(h.astype(cdt) + b2_ref[...])

    # --- Layer 3 (Dropout(0.4) == identity in eval mode) ---
    h = jnp.dot(h.astype(jnp.bfloat16), w3_ref[...],
                preferred_element_type=jnp.float32)
    h = _leaky_relu(h.astype(cdt) + b3_ref[...])

    # --- Layer 4: N=1 output -> VPU multiply + XLU cross-lane reduce (b4 added in wrapper) ---
    out = jnp.sum(h.astype(jnp.float32) * w4_ref[...], axis=-1, keepdims=True)
    out_ref[...] = out.astype(out_ref.dtype)


def prepare_discriminator_params(params, elementwise_dtype=None):
    """One-time preprocessing (call once per parameter update, OUTSIDE the hot path):
    bf16 weight casts, label table (embedding @ w1[256:] + b1) padded to 16 rows."""
    cdt = elementwise_dtype if elementwise_dtype is not None else _elementwise_dtype_for_backend()

    w1_img = params["w1"][:IMG_FEATURES]                       # (256, 512)
    w1_lab = params["w1"][IMG_FEATURES:]                       # (10, 512)
    tbl = jnp.dot(params["embedding"], w1_lab) + params["b1"]  # (10, 512), b1 folded
    tbl = jnp.pad(tbl, ((0, N_CLASSES_PAD - N_CLASSES), (0, 0)))

    return {
        "label_tbl": tbl.astype(jnp.bfloat16),                 # (16, 512) resident
        "w1": w1_img.astype(jnp.bfloat16),
        "w2": params["w2"].astype(jnp.bfloat16),
        "b2": params["b2"].astype(cdt),
        "w3": params["w3"].astype(jnp.bfloat16),
        "b3": params["b3"].astype(cdt),
        "w4": params["w4"].reshape(1, HIDDEN).astype(jnp.float32),
        "b4": params["b4"].astype(jnp.float32),                # added after the kernel
    }


def discriminator_forward(img, labels, prepared, *, tile_b=512):
    """img: (B, C, H, W) float32; labels: (B,) int; returns (B, 1) float32.

    tile_b: batch tile (default 512; keep <=512 on v5e's smaller scoped VMEM).
    Batches are padded to a multiple of 16 rows; batches >= 32 rows always use
    >= 2 grid tiles so both v7x TensorCores get work.
    """
    B = img.shape[0]
    img_flat = img.reshape(B, IMG_FEATURES).astype(jnp.bfloat16)
    labels2d = labels.astype(jnp.int32).reshape(B, 1)

    # ---- batch tiling ----
    bp0 = _round_up(B, MIN_TILE_B)
    tb = min(tile_b, bp0)
    if bp0 // tb < 2 and bp0 >= 2 * MIN_TILE_B:
        # Guarantee >= 2 batch tiles so "parallel" can shard across TCs (v7x megacore).
        tb = _round_up(-(-bp0 // 2), MIN_TILE_B)
    bp = _round_up(bp0, tb)
    if bp != B:
        pad = bp - B
        img_flat = jnp.pad(img_flat, ((0, pad), (0, 0)))
        labels2d = jnp.pad(labels2d, ((0, pad), (0, 0)))
    n_tiles = bp // tb

    def act_spec(f):
        return pl.BlockSpec((tb, f), lambda i: (i, 0))

    def resident(r, c):
        # Same block for every batch tile -> stays VMEM-resident.
        return pl.BlockSpec((r, c), lambda i: (0, 0))

    out = pl.pallas_call(
        discriminator_kernel,
        out_shape=jax.ShapeDtypeStruct((bp, 1), jnp.float32),
        grid=(n_tiles,),
        in_specs=[
            act_spec(IMG_FEATURES),                 # (tb, 256)  bf16 image tile
            act_spec(1),                            # (tb, 1)    int32 labels tile
            resident(N_CLASSES_PAD, HIDDEN),        # (16, 512)  bf16 label table (+ b1)
            resident(IMG_FEATURES, HIDDEN),         # w1 image part (bf16)
            resident(HIDDEN, HIDDEN),               # w2 (bf16)
            resident(1, HIDDEN),                    # b2 (compute dtype)
            resident(HIDDEN, HIDDEN),               # w3 (bf16)
            resident(1, HIDDEN),                    # b3 (compute dtype)
            resident(1, HIDDEN),                    # w4 as a (1, 512) row (f32)
        ],
        out_specs=pl.BlockSpec((tb, 1), lambda i: (i, 0)),
        compiler_params=pltpu.CompilerParams(
            dimension_semantics=("parallel",)),     # shard batch tiles across TCs
    )(img_flat, labels2d, prepared["label_tbl"], prepared["w1"],
      prepared["w2"], prepared["b2"], prepared["w3"], prepared["b3"],
      prepared["w4"])

    return out[:B] + prepared["b4"]


def init_params(key):
    """Deterministic synthetic parameters with the shapes the module implies."""
    ks = jax.random.split(key, 9)

    def linear(kw, fan_in, fan_out):
        bound = 1.0 / np.sqrt(fan_in)
        return jax.random.uniform(kw, (fan_in, fan_out), jnp.float32, -bound, bound)

    return {
        "embedding": jax.random.normal(ks[0], (N_CLASSES, N_CLASSES), jnp.float32),
        "w1": linear(ks[1], IN_FEATURES, HIDDEN),
        "b1": jax.random.uniform(ks[2], (1, HIDDEN), jnp.float32, -0.01, 0.01),
        "w2": linear(ks[3], HIDDEN, HIDDEN),
        "b2": jax.random.uniform(ks[4], (1, HIDDEN), jnp.float32, -0.01, 0.01),
        "w3": linear(ks[5], HIDDEN, HIDDEN),
        "b3": jax.random.uniform(ks[6], (1, HIDDEN), jnp.float32, -0.01, 0.01),
        "w4": linear(ks[7], HIDDEN, 1),
        "b4": jax.random.uniform(ks[8], (1, 1), jnp.float32, -0.01, 0.01),
    }


if __name__ == "__main__":
    key = jax.random.PRNGKey(0)
    k_img, k_lab, k_par = jax.random.split(key, 3)

    B = 4
    img = jax.random.normal(k_img, (B, CHANNELS, IMG_SIZE, IMG_SIZE), jnp.float32)
    labels = jax.random.randint(k_lab, (B,), 0, N_CLASSES, jnp.int32)
    params = init_params(k_par)

    prepared = prepare_discriminator_params(params)
    validity = discriminator_forward(img, labels, prepared)
    validity = jax.block_until_ready(validity)

    # Pure-JAX reference mirroring the kernel's mixed precision (bf16 MXU operands,
    # f32 accumulation, kernel compute dtype for the elementwise chain, eval-mode
    # dropout identity) and the torch forward:
    #   d_in = cat([img.view(B,-1), embedding(labels)]) -> MLP 266-512-512-512-1.
    cdt = prepared["b2"].dtype
    tbl_bf = (jnp.dot(params["embedding"], params["w1"][IMG_FEATURES:])
              + params["b1"]).astype(jnp.bfloat16)
    lab = tbl_bf[labels].astype(jnp.float32)
    x_bf = img.reshape(B, -1).astype(jnp.bfloat16)
    h = jnp.dot(x_bf, params["w1"][:IMG_FEATURES].astype(jnp.bfloat16),
                preferred_element_type=jnp.float32) + lab
    h = h.astype(cdt)
    h = jnp.maximum(h, 0.2 * h)
    h = jnp.dot(h.astype(jnp.bfloat16), params["w2"].astype(jnp.bfloat16),
                preferred_element_type=jnp.float32)
    h = h.astype(cdt) + params["b2"].astype(cdt)
    h = jnp.maximum(h, 0.2 * h)
    h = jnp.dot(h.astype(jnp.bfloat16), params["w3"].astype(jnp.bfloat16),
                preferred_element_type=jnp.float32)
    h = h.astype(cdt) + params["b3"].astype(cdt)
    h = jnp.maximum(h, 0.2 * h)
    ref = jnp.sum(h.astype(jnp.float32) * params["w4"].reshape(1, HIDDEN),
                  axis=-1, keepdims=True) + params["b4"]

    np.testing.assert_allclose(np.asarray(validity), np.asarray(ref),
                               rtol=2e-2, atol=2e-2)
    assert validity.shape == (B, 1)
    print("KERNEL_OK")
</pallas_src>

<mosaic_0001>
module attributes {stable_mosaic.version = 11 : i64} {
  func.func @discriminator_kernel(%arg0: i32, %arg1: memref<16x256xbf16, #tpu.memory_space<vmem>>, %arg2: memref<16x1xi32, #tpu.memory_space<vmem>>, %arg3: memref<16x512xbf16, #tpu.memory_space<vmem>>, %arg4: memref<256x512xbf16, #tpu.memory_space<vmem>>, %arg5: memref<512x512xbf16, #tpu.memory_space<vmem>>, %arg6: memref<1x512xbf16, #tpu.memory_space<vmem>>, %arg7: memref<512x512xbf16, #tpu.memory_space<vmem>>, %arg8: memref<1x512xbf16, #tpu.memory_space<vmem>>, %arg9: memref<1x512xf32, #tpu.memory_space<vmem>>, %arg10: memref<16x1xf32, #tpu.memory_space<vmem>>) attributes {dimension_semantics = [#tpu.dimension_semantics<parallel>], iteration_bounds = array<i64: 1>, scalar_prefetch = 0 : i64, scratch_operands = 0 : i64, tpu.core_type = #tpu.core_type<tc>, window_params = [{transform_indices = @transform_0, window_bounds = array<i64: 16, 256>}, {transform_indices = @transform_1, window_bounds = array<i64: 16, 1>}, {pipeline_mode = #tpu.pipeline_mode<synchronous>, transform_indices = @transform_2, window_bounds = array<i64: 16, 512>}, {pipeline_mode = #tpu.pipeline_mode<synchronous>, transform_indices = @transform_3, window_bounds = array<i64: 256, 512>}, {pipeline_mode = #tpu.pipeline_mode<synchronous>, transform_indices = @transform_4, window_bounds = array<i64: 512, 512>}, {pipeline_mode = #tpu.pipeline_mode<synchronous>, transform_indices = @transform_5, window_bounds = array<i64: 1, 512>}, {pipeline_mode = #tpu.pipeline_mode<synchronous>, transform_indices = @transform_6, window_bounds = array<i64: 512, 512>}, {pipeline_mode = #tpu.pipeline_mode<synchronous>, transform_indices = @transform_7, window_bounds = array<i64: 1, 512>}, {pipeline_mode = #tpu.pipeline_mode<synchronous>, transform_indices = @transform_8, window_bounds = array<i64: 1, 512>}, {transform_indices = @transform_9, window_bounds = array<i64: 16, 1>}]} {
    %0 = tpu.iota {dimensions = array<i32: 1>} : vector<16x16xi32>
    %c0 = arith.constant 0 : index
    %c0_0 = arith.constant 0 : index
    %1 = vector.load %arg2[%c0, %c0_0] : memref<16x1xi32, #tpu.memory_space<vmem>>, vector<16x1xi32>
    %2 = vector.broadcast %1 : vector<16x1xi32> to vector<16x16xi32>
    %3 = arith.cmpi eq, %2, %0 : vector<16x16xi32>
    %cst = arith.constant 1.000000e+00 : f32
    %cst_1 = arith.constant 0.000000e+00 : f32
    %4 = vector.broadcast %cst : f32 to vector<16x16xf32>
    %5 = vector.broadcast %cst_1 : f32 to vector<16x16xf32>
    %6 = arith.select %3, %4, %5 : vector<16x16xi1>, vector<16x16xf32>
    %7 = arith.truncf %6 : vector<16x16xf32> to vector<16x16xbf16>
    %c0_2 = arith.constant 0 : index
    %c0_3 = arith.constant 0 : index
    %8 = vector.load %arg3[%c0_2, %c0_3] : memref<16x512xbf16, #tpu.memory_space<vmem>>, vector<16x512xbf16>
    %cst_4 = arith.constant dense<0.000000e+00> : vector<16x512xf32>
    %9 = tpu.matmul %7, %8, %cst_4 {dimension_numbers = #tpu.dot_dimension_numbers<[1], [0], [0], [1], [0, 0, 1, 1], [], []>} : vector<16x16xbf16>, vector<16x512xbf16>, vector<16x512xf32> -> vector<16x512xf32>
    %c0_5 = arith.constant 0 : index
    %c0_6 = arith.constant 0 : index
    %10 = vector.load %arg1[%c0_5, %c0_6] : memref<16x256xbf16, #tpu.memory_space<vmem>>, vector<16x256xbf16>
    %c0_7 = arith.constant 0 : index
    %c0_8 = arith.constant 0 : index
    %11 = vector.load %arg4[%c0_7, %c0_8] : memref<256x512xbf16, #tpu.memory_space<vmem>>, vector<256x512xbf16>
    %cst_9 = arith.constant dense<0.000000e+00> : vector<16x512xf32>
    %12 = tpu.matmul %10, %11, %cst_9 {dimension_numbers = #tpu.dot_dimension_numbers<[1], [0], [0], [1], [0, 0, 1, 1], [], []>} : vector<16x256xbf16>, vector<256x512xbf16>, vector<16x512xf32> -> vector<16x512xf32>
    %13 = arith.addf %12, %9 : vector<16x512xf32>
    %14 = arith.truncf %13 : vector<16x512xf32> to vector<16x512xbf16>
    %cst_10 = arith.constant 2.001950e-01 : bf16
    %15 = vector.broadcast %cst_10 : bf16 to vector<16x512xbf16>
    %16 = arith.mulf %15, %14 : vector<16x512xbf16>
    %17 = arith.maximumf %14, %16 : vector<16x512xbf16>
    %c0_11 = arith.constant 0 : index
    %c0_12 = arith.constant 0 : index
    %18 = vector.load %arg5[%c0_11, %c0_12] : memref<512x512xbf16, #tpu.memory_space<vmem>>, vector<512x512xbf16>
    %cst_13 = arith.constant dense<0.000000e+00> : vector<16x512xf32>
    %19 = tpu.matmul %17, %18, %cst_13 {dimension_numbers = #tpu.dot_dimension_numbers<[1], [0], [0], [1], [0, 0, 1, 1], [], []>} : vector<16x512xbf16>, vector<512x512xbf16>, vector<16x512xf32> -> vector<16x512xf32>
    %20 = arith.truncf %19 : vector<16x512xf32> to vector<16x512xbf16>
    %c0_14 = arith.constant 0 : index
    %c0_15 = arith.constant 0 : index
    %21 = vector.load %arg6[%c0_14, %c0_15] : memref<1x512xbf16, #tpu.memory_space<vmem>>, vector<1x512xbf16>
    %22 = vector.broadcast %21 : vector<1x512xbf16> to vector<16x512xbf16>
    %23 = arith.addf %20, %22 : vector<16x512xbf16>
    %cst_16 = arith.constant 2.001950e-01 : bf16
    %24 = vector.broadcast %cst_16 : bf16 to vector<16x512xbf16>
    %25 = arith.mulf %24, %23 : vector<16x512xbf16>
    %26 = arith.maximumf %23, %25 : vector<16x512xbf16>
    %c0_17 = arith.constant 0 : index
    %c0_18 = arith.constant 0 : index
    %27 = vector.load %arg7[%c0_17, %c0_18] : memref<512x512xbf16, #tpu.memory_space<vmem>>, vector<512x512xbf16>
    %cst_19 = arith.constant dense<0.000000e+00> : vector<16x512xf32>
    %28 = tpu.matmul %26, %27, %cst_19 {dimension_numbers = #tpu.dot_dimension_numbers<[1], [0], [0], [1], [0, 0, 1, 1], [], []>} : vector<16x512xbf16>, vector<512x512xbf16>, vector<16x512xf32> -> vector<16x512xf32>
    %29 = arith.truncf %28 : vector<16x512xf32> to vector<16x512xbf16>
    %c0_20 = arith.constant 0 : index
    %c0_21 = arith.constant 0 : index
    %30 = vector.load %arg8[%c0_20, %c0_21] : memref<1x512xbf16, #tpu.memory_space<vmem>>, vector<1x512xbf16>
    %31 = vector.broadcast %30 : vector<1x512xbf16> to vector<16x512xbf16>
    %32 = arith.addf %29, %31 : vector<16x512xbf16>
    %cst_22 = arith.constant 2.001950e-01 : bf16
    %33 = vector.broadcast %cst_22 : bf16 to vector<16x512xbf16>
    %34 = arith.mulf %33, %32 : vector<16x512xbf16>
    %35 = arith.maximumf %32, %34 : vector<16x512xbf16>
    %36 = arith.extf %35 : vector<16x512xbf16> to vector<16x512xf32>
    %c0_23 = arith.constant 0 : index
    %c0_24 = arith.constant 0 : index
    %37 = vector.load %arg9[%c0_23, %c0_24] : memref<1x512xf32, #tpu.memory_space<vmem>>, vector<1x512xf32>
    %38 = vector.broadcast %37 : vector<1x512xf32> to vector<16x512xf32>
    %39 = arith.mulf %36, %38 : vector<16x512xf32>
    %cst_25 = arith.constant dense<0.000000e+00> : vector<16xf32>
    %40 = vector.multi_reduction <add>, %39, %cst_25 [1] : vector<16x512xf32> to vector<16xf32>
    %41 = vector.shape_cast %40 : vector<16xf32> to vector<16x1xf32>
    %c0_26 = arith.constant 0 : index
    %c0_27 = arith.constant 0 : index
    %42 = vector.load %arg10[%c0_26, %c0_27] : memref<16x1xf32, #tpu.memory_space<vmem>>, vector<16x1xf32>
    tpu.vector_store %arg10[%c0_26, %c0_27], %41 {strides = array<i32>} : memref<16x1xf32, #tpu.memory_space<vmem>>, vector<16x1xf32>,
    return
  }
  func.func @transform_0(%arg0: i32) -> (i32, i32) {
    %c0_i32 = arith.constant 0 : i32
    %c0_i32_0 = arith.constant 0 : i32
    return %arg0, %c0_i32 : i32, i32
  }
  func.func @transform_1(%arg0: i32) -> (i32, i32) {
    %c0_i32 = arith.constant 0 : i32
    %c0_i32_0 = arith.constant 0 : i32
    return %arg0, %c0_i32 : i32, i32
  }
  func.func @transform_2(%arg0: i32) -> (i32, i32) {
    %c0_i32 = arith.constant 0 : i32
    %c0_i32_0 = arith.constant 0 : i32
    %c0_i32_1 = arith.constant 0 : i32
    return %c0_i32, %c0_i32_0 : i32, i32
  }
  func.func @transform_3(%arg0: i32) -> (i32, i32) {
    %c0_i32 = arith.constant 0 : i32
    %c0_i32_0 = arith.constant 0 : i32
    %c0_i32_1 = arith.constant 0 : i32
    return %c0_i32, %c0_i32_0 : i32, i32
  }
  func.func @transform_4(%arg0: i32) -> (i32, i32) {
    %c0_i32 = arith.constant 0 : i32
    %c0_i32_0 = arith.constant 0 : i32
    %c0_i32_1 = arith.constant 0 : i32
    return %c0_i32, %c0_i32_0 : i32, i32
  }
  func.func @transform_5(%arg0: i32) -> (i32, i32) {
    %c0_i32 = arith.constant 0 : i32
    %c0_i32_0 = arith.constant 0 : i32
    %c0_i32_1 = arith.constant 0 : i32
    return %c0_i32, %c0_i32_0 : i32, i32
  }
  func.func @transform_6(%arg0: i32) -> (i32, i32) {
    %c0_i32 = arith.constant 0 : i32
    %c0_i32_0 = arith.constant 0 : i32
    %c0_i32_1 = arith.constant 0 : i32
    return %c0_i32, %c0_i32_0 : i32, i32
  }
  func.func @transform_7(%arg0: i32) -> (i32, i32) {
    %c0_i32 = arith.constant 0 : i32
    %c0_i32_0 = arith.constant 0 : i32
    %c0_i32_1 = arith.constant 0 : i32
    return %c0_i32, %c0_i32_0 : i32, i32
  }
  func.func @transform_8(%arg0: i32) -> (i32, i32) {
    %c0_i32 = arith.constant 0 : i32
    %c0_i32_0 = arith.constant 0 : i32
    %c0_i32_1 = arith.constant 0 : i32
    return %c0_i32, %c0_i32_0 : i32, i32
  }
  func.func @transform_9(%arg0: i32) -> (i32, i32) {
    %c0_i32 = arith.constant 0 : i32
    %c0_i32_0 = arith.constant 0 : i32
    return %arg0, %c0_i32 : i32, i32
  }
}

</mosaic_0001>

<bundles_post_ra>
// kernel: tpu_custom_call.1
= control target key start
LH: loop header
LB: loop body
LE: loop exit
PB: predicated region body
PF: predicated region fallthrough
CT: control target
= control target key end

     0   :  { %14 = vsyncpa [#allocation3], 0  ;;  %s3869_s0 = inlined_call_operand.vmem [shape: bf16[16,256], index: 0, kind: input, shape index: {}]   ;;  %s3870_s1 = inlined_call_operand.vmem [shape: s32[16,1], index: 1, kind: input, shape index: {}]   ;;  %s3871_s2 = inlined_call_operand.hbm [shape: bf16[16,512], index: 2, kind: input, shape index: {}]   ;;  %s3872_s3 = inlined_call_operand.hbm [shape: bf16[256,512], index: 3, kind: input, shape index: {}]   ;;  %s3873_s4 = inlined_call_operand.hbm [shape: bf16[512,512], index: 4, kind: input, shape index: {}]   ;;  %s3874_s5 = inlined_call_operand.vmem [shape: bf16[1,512], index: 5, kind: input, shape index: {}]   ;;  %s3875_s6 = inlined_call_operand.hbm [shape: bf16[512,512], index: 6, kind: input, shape index: {}]   ;;  %s3876_s7 = inlined_call_operand.vmem [shape: bf16[1,512], index: 7, kind: input, shape index: {}]   ;;  %s3877_s8 = inlined_call_operand.vmem [shape: f32[1,512], index: 8, kind: input, shape index: {}]   ;;  %s3878_s9 = inlined_call_operand.vmem [shape: f32[16,1], index: 9, kind: output, shape index: {}]  }
   0x1   :  { %15 = vsyncpa [#allocation5], 0 }
   0x2   :  { %16 = vsyncpa [#allocation8], 0  ;;  %s3705_s30 = smov [#allocation4]   ;;  %s3706_s11 = smov [#allocation2]  }
   0x3   :  { %s38_s10 = sshll.u32 %s3705_s30, 4  ;;  %s26_s12 = sshll.u32 %s3706_s11, 4  ;;  %s39_s10 = int_to_ptr.vmem [resolvable:$true] %s38_s10  ;;  %s27_s12 = int_to_ptr.vmem [resolvable:$true] %s26_s12 }
   0x4   :  { %s3627_s13 = scalar_lea.vmem %s39_s10, 8192  ;;  %p3632_p1 = scmp.lt.s32.totalorder %s39_s10, %s39_s10 }
   0x5   :  { %p3628_p0 = scmp.ne.s32.totalorder %s39_s10, %s3627_s13  ;;  %p3633_p2 = scmp.lt.s32.totalorder %s3627_s13, %s3627_s13 }
   0x7   :  { %p3634_p3 = por %p3633_p2, %p3632_p1 }
   0x9   :  { %p3635_p4 = pnand %p3634_p3, %p3628_p0 }
   0xb   :  { %3638 = shalt.err (!%p3635_p4)
}
   0xc   :  { %s3707_s14 = smov 256   ;;  %s3708_s15 = smov 16  }
   0xd   :  { %44 = dma.hbm_to_vmem [thread:$0]  %s3872_s3, 8192, %s39_s10, [#allocation5], %s3707_s14, %s3707_s14, %s3708_s15  }
   0xe   :  { %s3647_s18 = scalar_lea.vmem %s27_s12, 512  ;;  %p3652_p6 = scmp.lt.s32.totalorder %s27_s12, %s27_s12 }
   0xf   :  { %p3648_p5 = scmp.ne.s32.totalorder %s27_s12, %s3647_s18  ;;  %p3653_p7 = scmp.lt.s32.totalorder %s3647_s18, %s3647_s18 }
  0x11   :  { %p3654_p8 = por %p3653_p7, %p3652_p6 }
  0x13   :  { %p3655_p9 = pnand %p3654_p8, %p3648_p5 }
  0x15   :  { %3658 = shalt.err (!%p3655_p9)
}
  0x16   :  { %32 = dma.hbm_to_vmem [thread:$0]  %s3871_s2, 512, %s27_s12, [#allocation3], %s3707_s14, %s3707_s14, %s3708_s15  }
  0x17   :  { %s3709_s21 = smov [#allocation6]   ;;  %s3710_s23 = smov [#allocation7]  }
  0x18   :  { %s50_s22 = sshll.u32 %s3709_s21, 4  ;;  %s64_s24 = sshll.u32 %s3710_s23, 4  ;;  %s51_s22 = int_to_ptr.vmem [resolvable:$true] %s50_s22  ;;  %s65_s24 = int_to_ptr.vmem [resolvable:$true] %s64_s24 }
  0x19   :  { %s3667_s3 = scalar_lea.vmem %s51_s22, 16384  ;;  %p3672_p11 = scmp.lt.s32.totalorder %s51_s22, %s51_s22 }
  0x1a   :  { %p3668_p10 = scmp.ne.s32.totalorder %s51_s22, %s3667_s3  ;;  %p3673_p12 = scmp.lt.s32.totalorder %s3667_s3, %s3667_s3 }
  0x1c   :  { %p3674_p13 = por %p3673_p12, %p3672_p11 }
  0x1e   :  { %p3675_p0 = pnand %p3674_p13, %p3668_p10 }
  0x20   :  { %3678 = shalt.err (!%p3675_p0)
}
  0x21   :  { %56 = dma.hbm_to_vmem [thread:$0]  %s3873_s4, 16384, %s51_s22, [#allocation5], %s3707_s14, %s3707_s14, %s3708_s15  }
  0x22   :  { %s3687_s2 = scalar_lea.vmem %s65_s24, 16384  ;;  %p3692_p2 = scmp.lt.s32.totalorder %s65_s24, %s65_s24 }
  0x23   :  { %p3688_p1 = scmp.ne.s32.totalorder %s65_s24, %s3687_s2  ;;  %p3693_p3 = scmp.lt.s32.totalorder %s3687_s2, %s3687_s2 }
  0x25   :  { %p3694_p4 = por %p3693_p3, %p3692_p2 }
  0x27   :  { %p3695_p5 = pnand %p3694_p4, %p3688_p1 }
  0x29   :  { %3698 = shalt.err (!%p3695_p5)
}
  0x2a   :  { %70 = dma.hbm_to_vmem [thread:$0]  %s3875_s6, 16384, %s65_s24, [#allocation8], %s3707_s14, %s3707_s14, %s3708_s15  }
  0x2b   :  { %3699 = dma.done.wait [#allocation3], 512  }
  0x2c   :  { %3700 = vsyncadd [#allocation3], 4294966784 }
  0x2d   :  { %3701 = dma.done.wait [#allocation5], 24576  }
  0x2e   :  { %3702 = vsyncadd [#allocation5], 4294942720 }
  0x2f   :  { %3703 = dma.done.wait [#allocation8], 16384  }
  0x30   :  { %3704 = vsyncadd [#allocation8], 4294950912  ;;  %v3711_v0 = vmov 0   ;;  %v91_v1 = vld [vmem:[%s3870_s1] sm:$0xff]  ;;  %v92_v2 = vld [vmem:[%s3870_s1 + $0x8] sm:$0xff]  ;;  %v89_v9 = vlaneseq  ;;  %v3712_v17 = vmov 0.0  }
  0x31   :  { %3129 = vset.pattern.permute.xlu0 %v3711_v0  ;;  %164 = vmatprep.mubr.bf16.mxu0 %v3711_v0  ;;  %v3130_v3 = vld [vmem:[#allocation2 + $0x4] ss:$16 sps:$4 sm:$0xff]   ;;  %v3132_v4 = vld [vmem:[#allocation2 + $0xc] ss:$16 sps:$4 sm:$0xff]   ;;  %v3134_v5 = vld [vmem:[#allocation2] ss:$16 sps:$4 sm:$0xff]  }
  0x32   :  { %207 = vmatprep.mubr.bf16.mxu1 %v3711_v0  ;;  %94 = vperm.xlu0 %3129, %v91_v1   ;;  %v3135_v6 = vld [vmem:[#allocation2 + $0x8] ss:$16 sps:$4 sm:$0xff]   ;;  %v3138_v7 = vld [vmem:[#allocation4 + $0xe4] ss:$16 sps:$4 sm:$0xff]   ;;  %v3141_v8 = vld [vmem:[#allocation4 + $0xec] ss:$16 sps:$4 sm:$0xff]  }
  0x33   :  { %146 = vmatprep.subr.bf16.mxu0 %v3130_v3  ;;  %189 = vmatprep.subr.bf16.mxu1 %v3132_v4  ;;  %v90_v10 = vand.u32 127, %v89_v9  ;;  %v3136_v13 = vld [vmem:[#allocation4 + $0xe0] ss:$16 sps:$4 sm:$0xff]   ;;  %v3139_v14 = vld [vmem:[#allocation4 + $0xe8] ss:$16 sps:$4 sm:$0xff]   ;;  %vm128_vm2 = vcmask 130048  }
  0x34   :  { %147 = vmatpush1.bf16.msra.mxu0 %v3134_v5  ;;  %190 = vmatpush1.bf16.msra.mxu1 %v3135_v6  ;;  %v3144_v15 = vld [vmem:[#allocation4 + $0xc4] ss:$16 sps:$4 sm:$0xff]   ;;  %v3147_v16 = vld [vmem:[#allocation4 + $0xcc] ss:$16 sps:$4 sm:$0xff]   ;;  %v3142_v22 = vld [vmem:[#allocation4 + $0xc0] ss:$16 sps:$4 sm:$0xff]  }
  0x35   :  { %614 = vmatprep.subr.bf16.mxu0 %v3138_v7  ;;  %657 = vmatprep.subr.bf16.mxu1 %v3141_v8  ;;  %v3234_v21 = vld [vmem:[%s3869_s0 + $0x4] ss:$8 sps:$4 sm:$0xff]   ;;  %v3145_v23 = vld [vmem:[#allocation4 + $0xc8] ss:$16 sps:$4 sm:$0xff]   ;;  %v3148_v26 = vld [vmem:[#allocation4 + $0xa0] ss:$16 sps:$4 sm:$0xff]  }
  0x36   :  { %97 = vperm.xlu0 %3129, %v92_v2   ;;  %v3150_v24 = vld [vmem:[#allocation4 + $0xa4] ss:$16 sps:$4 sm:$0xff]   ;;  %v3153_v25 = vld [vmem:[#allocation4 + $0xac] ss:$16 sps:$4 sm:$0xff]   ;;  %v3151_v27 = vld [vmem:[#allocation4 + $0xa8] ss:$16 sps:$4 sm:$0xff]  }
  0x37   :  { %v3156_v28 = vld [vmem:[#allocation4 + $0x84] ss:$16 sps:$4 sm:$0xff]   ;;  %v3159_v29 = vld [vmem:[#allocation4 + $0x8c] ss:$16 sps:$4 sm:$0xff]   ;;  %v3154_v30 = vld [vmem:[#allocation4 + $0x80] ss:$16 sps:$4 sm:$0xff]  }
  0x38   :  { %v3157_v31 = vld [vmem:[#allocation4 + $0x88] ss:$16 sps:$4 sm:$0xff]   ;;  %v3162_v32 = vld [vmem:[#allocation4 + $0x64] ss:$16 sps:$4 sm:$0xff]   ;;  %v3165_v33 = vld [vmem:[#allocation4 + $0x6c] ss:$16 sps:$4 sm:$0xff]  }
  0x39   :  { %v3160_v34 = vld [vmem:[#allocation4 + $0x60] ss:$16 sps:$4 sm:$0xff]   ;;  %v3163_v35 = vld [vmem:[#allocation4 + $0x68] ss:$16 sps:$4 sm:$0xff]   ;;  %v3168_v36 = vld [vmem:[#allocation4 + $0x44] ss:$16 sps:$4 sm:$0xff]  }
  0x3a   :  { %v3171_v37 = vld [vmem:[#allocation4 + $0x4c] ss:$16 sps:$4 sm:$0xff]   ;;  %v3166_v38 = vld [vmem:[#allocation4 + $0x40] ss:$16 sps:$4 sm:$0xff]   ;;  %v3169_v39 = vld [vmem:[#allocation4 + $0x48] ss:$16 sps:$4 sm:$0xff]  }
  0x3b   :  { %v3174_v40 = vld [vmem:[#allocation4 + $0x24] ss:$16 sps:$4 sm:$0xff]   ;;  %v3177_v41 = vld [vmem:[#allocation4 + $0x2c] ss:$16 sps:$4 sm:$0xff]   ;;  %v3172_v42 = vld [vmem:[#allocation4 + $0x20] ss:$16 sps:$4 sm:$0xff]  }
  0x3c   :  { %v3175_v43 = vld [vmem:[#allocation4 + $0x28] ss:$16 sps:$4 sm:$0xff]   ;;  %v3180_v44 = vld [vmem:[#allocation4 + $0x4] ss:$16 sps:$4 sm:$0xff]   ;;  %v3183_v45 = vld [vmem:[#allocation4 + $0xc] ss:$16 sps:$4 sm:$0xff]  }
  0x3d   :  { %v3178_v46 = vld [vmem:[#allocation4] ss:$16 sps:$4 sm:$0xff]   ;;  %v3181_v47 = vld [vmem:[#allocation4 + $0x8] ss:$16 sps:$4 sm:$0xff]   ;;  %v3186_v48 = vld [vmem:[#allocation4 + $0x1e4] ss:$16 sps:$4 sm:$0xff]  }
  0x3e   :  { %v3189_v49 = vld [vmem:[#allocation4 + $0x1ec] ss:$16 sps:$4 sm:$0xff]   ;;  %v3184_v50 = vld [vmem:[#allocation4 + $0x1e0] ss:$16 sps:$4 sm:$0xff]   ;;  %v3187_v51 = vld [vmem:[#allocation4 + $0x1e8] ss:$16 sps:$4 sm:$0xff]  }
  0x3f   :  { %v3192_v52 = vld [vmem:[#allocation4 + $0x1c4] ss:$16 sps:$4 sm:$0xff]   ;;  %v3195_v53 = vld [vmem:[#allocation4 + $0x1cc] ss:$16 sps:$4 sm:$0xff]   ;;  %v3190_v54 = vld [vmem:[#allocation4 + $0x1c0] ss:$16 sps:$4 sm:$0xff]  }
  0x40   :  { %v3193_v55 = vld [vmem:[#allocation4 + $0x1c8] ss:$16 sps:$4 sm:$0xff]   ;;  %v3198_v56 = vld [vmem:[#allocation4 + $0x1a4] ss:$16 sps:$4 sm:$0xff]   ;;  %v3201_v57 = vld [vmem:[#allocation4 + $0x1ac] ss:$16 sps:$4 sm:$0xff]  }
  0x41   :  { %v3196_v58 = vld [vmem:[#allocation4 + $0x1a0] ss:$16 sps:$4 sm:$0xff]   ;;  %v3199_v59 = vld [vmem:[#allocation4 + $0x1a8] ss:$16 sps:$4 sm:$0xff]   ;;  %v3204_v60 = vld [vmem:[#allocation4 + $0x184] ss:$16 sps:$4 sm:$0xff]  }
  0x42   :  { %v3207_v61 = vld [vmem:[#allocation4 + $0x18c] ss:$16 sps:$4 sm:$0xff]   ;;  %v3202_v62 = vld [vmem:[#allocation4 + $0x180] ss:$16 sps:$4 sm:$0xff]   ;;  %v3205_v63 = vld [vmem:[#allocation4 + $0x188] ss:$16 sps:$4 sm:$0xff]  }
  0x43   :  { %v3210_v0 = vld [vmem:[#allocation4 + $0x164] ss:$16 sps:$4 sm:$0xff]   ;;  %v3213_v1 = vld [vmem:[#allocation4 + $0x16c] ss:$16 sps:$4 sm:$0xff]   ;;  %v3208_v2 = vld [vmem:[#allocation4 + $0x160] ss:$16 sps:$4 sm:$0xff]  }
  0x44   :  { %v3211_v3 = vld [vmem:[#allocation4 + $0x168] ss:$16 sps:$4 sm:$0xff]   ;;  %v3216_v4 = vld [vmem:[#allocation4 + $0x144] ss:$16 sps:$4 sm:$0xff]   ;;  %v3219_v5 = vld [vmem:[#allocation4 + $0x14c] ss:$16 sps:$4 sm:$0xff]  }
  0x45   :  { %v3214_v6 = vld [vmem:[#allocation4 + $0x140] ss:$16 sps:$4 sm:$0xff]   ;;  %v3217_v7 = vld [vmem:[#allocation4 + $0x148] ss:$16 sps:$4 sm:$0xff]   ;;  %v3222_v8 = vld [vmem:[#allocation4 + $0x124] ss:$16 sps:$4 sm:$0xff]  }
  0x46   :  { %vm2780_vm3 = vcmask 7168  }
  0xad   :  { %v95_v11 = vpop.permute.xlu0 %94 }
  0xae   :  { %vm99_vm0 = vcmp.eq.s32.totalorder %v95_v11, %v90_v10  ;;  %v3220_v11 = vld [vmem:[#allocation4 + $0x120] ss:$16 sps:$4 sm:$0xff]  }
  0xaf   :  { %v101_v18 = vsel %vm99_vm0, 1.0, %v3712_v17 }
  0xb1   :  { %v98_v12 = vpop.permute.xlu0 %97 }
  0xb2   :  { %vm100_vm1 = vcmp.eq.s32.totalorder %v98_v12, %v90_v10  ;;  %v3225_v10 = vld [vmem:[#allocation4 + $0x12c] ss:$16 sps:$4 sm:$0xff]   ;;  %v3223_v12 = vld [vmem:[#allocation4 + $0x128] ss:$16 sps:$4 sm:$0xff]  }
  0xb3   :  { %v102_v19 = vsel %vm100_vm1, 1.0, %v3712_v17  ;;  %v3232_v17 = vld [vmem:[%s3869_s0] ss:$8 sps:$4 sm:$0xff]  }
  0xb4   :  { %v103_v20 = vpack.c.bf16 %v102_v19, %v101_v18  ;;  %v3235_v18 = vld [vmem:[#allocation6 + $0xe0] ss:$16 sps:$4 sm:$0xff]   ;;  %v3237_v19 = vld [vmem:[#allocation6 + $0xe4] ss:$16 sps:$4 sm:$0xff]  }
  0xb6   :  { %2794 = vmatmul.mubr.msk.bf16.vlgmr.msra.gmra.mxu0 %vm128_vm2, %v103_v20  ;;  %2795 = vmatmul.mubr.msk.bf16.vlgmr.msra.gmra.mxu1 %vm128_vm2, %v103_v20  ;;  %v3238_v20 = vld [vmem:[#allocation6 + $0x2e0] ss:$16 sps:$4 sm:$0xff]  }
  0xb7   :  { %615 = vmatpush1.bf16.msra.mxu0 %v3136_v13  ;;  %658 = vmatpush1.bf16.msra.mxu1 %v3139_v14  ;;  %v3228_v13 = vld [vmem:[#allocation4 + $0x104] ss:$16 sps:$4 sm:$0xff]   ;;  %v3231_v14 = vld [vmem:[#allocation4 + $0x10c] ss:$16 sps:$4 sm:$0xff]  }
  0xb8   :  { %616 = vmatprep.subr.bf16.mxu0 %v3144_v15  ;;  %659 = vmatprep.subr.bf16.mxu1 %v3147_v16  ;;  %v3226_v15 = vld [vmem:[#allocation4 + $0x100] ss:$16 sps:$4 sm:$0xff]   ;;  %v3229_v16 = vld [vmem:[#allocation4 + $0x108] ss:$16 sps:$4 sm:$0xff]  }
  0xb9   :  { %646 = vmatprep.mubr.bf16.mxu0 %v3234_v21  ;;  %689 = vmatprep.mubr.bf16.mxu1 %v3234_v21  ;;  %v3240_v21 = vld [vmem:[#allocation6 + $0x2e4] ss:$16 sps:$4 sm:$0xff]  }
  0xbb   :  { %617 = vmatpush1.bf16.msra.mxu0 %v3142_v22  ;;  %660 = vmatpush1.bf16.msra.mxu1 %v3145_v23  ;;  %v3243_v22 = vld [vmem:[#allocation6 + $0xc4] ss:$16 sps:$4 sm:$0xff]  }
  0xbc   :  { %618 = vmatprep.subr.bf16.mxu0 %v3150_v24  ;;  %661 = vmatprep.subr.bf16.mxu1 %v3153_v25  ;;  %v3246_v23 = vld [vmem:[#allocation6 + $0x2c4] ss:$16 sps:$4 sm:$0xff]   ;;  %v3241_v24 = vld [vmem:[#allocation6 + $0xc0] ss:$16 sps:$4 sm:$0xff]  }
  0xbd   :  { %v3244_v25 = vld [vmem:[#allocation6 + $0x2c0] ss:$16 sps:$4 sm:$0xff]  }
  0xbf   :  { %619 = vmatpush1.bf16.msra.mxu0 %v3148_v26  ;;  %662 = vmatpush1.bf16.msra.mxu1 %v3151_v27  ;;  %v3249_v26 = vld [vmem:[#allocation6 + $0xa4] ss:$16 sps:$4 sm:$0xff]  }
  0xc0   :  { %620 = vmatprep.subr.bf16.mxu0 %v3156_v28  ;;  %663 = vmatprep.subr.bf16.mxu1 %v3159_v29  ;;  %v3252_v27 = vld [vmem:[#allocation6 + $0x2a4] ss:$16 sps:$4 sm:$0xff]   ;;  %v3247_v28 = vld [vmem:[#allocation6 + $0xa0] ss:$16 sps:$4 sm:$0xff]  }
  0xc1   :  { %v3250_v29 = vld [vmem:[#allocation6 + $0x2a0] ss:$16 sps:$4 sm:$0xff]  }
  0xc3   :  { %621 = vmatpush1.bf16.msra.mxu0 %v3154_v30  ;;  %664 = vmatpush1.bf16.msra.mxu1 %v3157_v31  ;;  %v3255_v30 = vld [vmem:[#allocation6 + $0x84] ss:$16 sps:$4 sm:$0xff]  }
  0xc4   :  { %622 = vmatprep.subr.bf16.mxu0 %v3162_v32  ;;  %665 = vmatprep.subr.bf16.mxu1 %v3165_v33  ;;  %v3258_v31 = vld [vmem:[#allocation6 + $0x284] ss:$16 sps:$4 sm:$0xff]   ;;  %v3253_v32 = vld [vmem:[#allocation6 + $0x80] ss:$16 sps:$4 sm:$0xff]  }
  0xc5   :  { %v3256_v33 = vld [vmem:[#allocation6 + $0x280] ss:$16 sps:$4 sm:$0xff]  }
  0xc7   :  { %623 = vmatpush1.bf16.msra.mxu0 %v3160_v34  ;;  %666 = vmatpush1.bf16.msra.mxu1 %v3163_v35  ;;  %v3261_v34 = vld [vmem:[#allocation6 + $0x64] ss:$16 sps:$4 sm:$0xff]  }
  0xc8   :  { %624 = vmatprep.subr.bf16.mxu0 %v3168_v36  ;;  %667 = vmatprep.subr.bf16.mxu1 %v3171_v37  ;;  %v3264_v35 = vld [vmem:[#allocation6 + $0x264] ss:$16 sps:$4 sm:$0xff]   ;;  %v3259_v36 = vld [vmem:[#allocation6 + $0x60] ss:$16 sps:$4 sm:$0xff]  }
  0xc9   :  { %v3262_v37 = vld [vmem:[#allocation6 + $0x260] ss:$16 sps:$4 sm:$0xff]  }
  0xcb   :  { %625 = vmatpush1.bf16.msra.mxu0 %v3166_v38  ;;  %668 = vmatpush1.bf16.msra.mxu1 %v3169_v39  ;;  %v3267_v38 = vld [vmem:[#allocation6 + $0x44] ss:$16 sps:$4 sm:$0xff]  }
  0xcc   :  { %626 = vmatprep.subr.bf16.mxu0 %v3174_v40  ;;  %669 = vmatprep.subr.bf16.mxu1 %v3177_v41  ;;  %v3270_v39 = vld [vmem:[#allocation6 + $0x244] ss:$16 sps:$4 sm:$0xff]   ;;  %v3265_v40 = vld [vmem:[#allocation6 + $0x40] ss:$16 sps:$4 sm:$0xff]  }
  0xcd   :  { %v3268_v41 = vld [vmem:[#allocation6 + $0x240] ss:$16 sps:$4 sm:$0xff]  }
  0xcf   :  { %627 = vmatpush1.bf16.msra.mxu0 %v3172_v42  ;;  %670 = vmatpush1.bf16.msra.mxu1 %v3175_v43  ;;  %v3273_v42 = vld [vmem:[#allocation6 + $0x24] ss:$16 sps:$4 sm:$0xff]  }
  0xd0   :  { %628 = vmatprep.subr.bf16.mxu0 %v3180_v44  ;;  %671 = vmatprep.subr.bf16.mxu1 %v3183_v45  ;;  %v3276_v43 = vld [vmem:[#allocation6 + $0x224] ss:$16 sps:$4 sm:$0xff]   ;;  %v3271_v44 = vld [vmem:[#allocation6 + $0x20] ss:$16 sps:$4 sm:$0xff]  }
  0xd1   :  { %v3274_v45 = vld [vmem:[#allocation6 + $0x220] ss:$16 sps:$4 sm:$0xff]  }
  0xd3   :  { %629 = vmatpush1.bf16.msra.mxu0 %v3178_v46  ;;  %672 = vmatpush1.bf16.msra.mxu1 %v3181_v47  ;;  %v3279_v46 = vld [vmem:[#allocation6 + $0x4] ss:$16 sps:$4 sm:$0xff]  }
  0xd4   :  { %630 = vmatprep.subr.bf16.mxu0 %v3186_v48  ;;  %673 = vmatprep.subr.bf16.mxu1 %v3189_v49  ;;  %v3282_v47 = vld [vmem:[#allocation6 + $0x204] ss:$16 sps:$4 sm:$0xff]   ;;  %v3277_v48 = vld [vmem:[#allocation6] ss:$16 sps:$4 sm:$0xff]  }
  0xd5   :  { %v3280_v49 = vld [vmem:[#allocation6 + $0x200] ss:$16 sps:$4 sm:$0xff]  }
  0xd7   :  { %631 = vmatpush2.bf16.msra.mxu0 %v3184_v50  ;;  %674 = vmatpush2.bf16.msra.mxu1 %v3187_v51  ;;  %v3285_v50 = vld [vmem:[#allocation6 + $0x1e4] ss:$16 sps:$4 sm:$0xff]  }
  0xd8   :  { %632 = vmatprep.subr.bf16.mxu0 %v3192_v52  ;;  %675 = vmatprep.subr.bf16.mxu1 %v3195_v53  ;;  %v3288_v51 = vld [vmem:[#allocation6 + $0x3e4] ss:$16 sps:$4 sm:$0xff]   ;;  %v3283_v52 = vld [vmem:[#allocation6 + $0x1e0] ss:$16 sps:$4 sm:$0xff]  }
  0xd9   :  { %v3286_v53 = vld [vmem:[#allocation6 + $0x3e0] ss:$16 sps:$4 sm:$0xff]  }
  0xdb   :  { %633 = vmatpush2.bf16.msra.mxu0 %v3190_v54  ;;  %676 = vmatpush2.bf16.msra.mxu1 %v3193_v55  ;;  %v3291_v54 = vld [vmem:[#allocation6 + $0x1c4] ss:$16 sps:$4 sm:$0xff]  }
  0xdc   :  { %634 = vmatprep.subr.bf16.mxu0 %v3198_v56  ;;  %677 = vmatprep.subr.bf16.mxu1 %v3201_v57  ;;  %v3294_v55 = vld [vmem:[#allocation6 + $0x3c4] ss:$16 sps:$4 sm:$0xff]   ;;  %v3289_v56 = vld [vmem:[#allocation6 + $0x1c0] ss:$16 sps:$4 sm:$0xff]  }
  0xdd   :  { %v3292_v57 = vld [vmem:[#allocation6 + $0x3c0] ss:$16 sps:$4 sm:$0xff]  }
  0xdf   :  { %635 = vmatpush2.bf16.msra.mxu0 %v3196_v58  ;;  %678 = vmatpush2.bf16.msra.mxu1 %v3199_v59  ;;  %v3297_v58 = vld [vmem:[#allocation6 + $0x1a4] ss:$16 sps:$4 sm:$0xff]  }
  0xe0   :  { %636 = vmatprep.subr.bf16.mxu0 %v3204_v60  ;;  %679 = vmatprep.subr.bf16.mxu1 %v3207_v61  ;;  %v3300_v59 = vld [vmem:[#allocation6 + $0x3a4] ss:$16 sps:$4 sm:$0xff]   ;;  %v3295_v60 = vld [vmem:[#allocation6 + $0x1a0] ss:$16 sps:$4 sm:$0xff]  }
  0xe1   :  { %v3298_v61 = vld [vmem:[#allocation6 + $0x3a0] ss:$16 sps:$4 sm:$0xff]  }
  0xe3   :  { %637 = vmatpush2.bf16.msra.mxu0 %v3202_v62  ;;  %680 = vmatpush2.bf16.msra.mxu1 %v3205_v63  ;;  %v3303_v62 = vld [vmem:[#allocation6 + $0x184] ss:$16 sps:$4 sm:$0xff]  }
  0xe4   :  { %638 = vmatprep.subr.bf16.mxu0 %v3210_v0  ;;  %681 = vmatprep.subr.bf16.mxu1 %v3213_v1  ;;  %v3306_v63 = vld [vmem:[#allocation6 + $0x384] ss:$16 sps:$4 sm:$0xff]   ;;  %v3301_v0 = vld [vmem:[#allocation6 + $0x180] ss:$16 sps:$4 sm:$0xff]  }
  0xe5   :  { %v3304_v1 = vld [vmem:[#allocation6 + $0x380] ss:$16 sps:$4 sm:$0xff]  }
  0xe7   :  { %639 = vmatpush2.bf16.msra.mxu0 %v3208_v2  ;;  %682 = vmatpush2.bf16.msra.mxu1 %v3211_v3  ;;  %v3309_v2 = vld [vmem:[#allocation6 + $0x164] ss:$16 sps:$4 sm:$0xff]  }
  0xe8   :  { %640 = vmatprep.subr.bf16.mxu0 %v3216_v4  ;;  %683 = vmatprep.subr.bf16.mxu1 %v3219_v5  ;;  %v3312_v3 = vld [vmem:[#allocation6 + $0x364] ss:$16 sps:$4 sm:$0xff]   ;;  %v3307_v4 = vld [vmem:[#allocation6 + $0x160] ss:$16 sps:$4 sm:$0xff]  }
  0xe9   :  { %v3310_v5 = vld [vmem:[#allocation6 + $0x360] ss:$16 sps:$4 sm:$0xff]  }
  0xeb   :  { %641 = vmatpush2.bf16.msra.mxu0 %v3214_v6  ;;  %684 = vmatpush2.bf16.msra.mxu1 %v3217_v7  ;;  %v3315_v6 = vld [vmem:[#allocation6 + $0x144] ss:$16 sps:$4 sm:$0xff]  }
  0xec   :  { %642 = vmatprep.subr.bf16.mxu0 %v3222_v8  ;;  %685 = vmatprep.subr.bf16.mxu1 %v3225_v10  ;;  %v3318_v7 = vld [vmem:[#allocation6 + $0x344] ss:$16 sps:$4 sm:$0xff]   ;;  %v3313_v8 = vld [vmem:[#allocation6 + $0x140] ss:$16 sps:$4 sm:$0xff]  }
  0xed   :  { %v3316_v10 = vld [vmem:[#allocation6 + $0x340] ss:$16 sps:$4 sm:$0xff]  }
  0xef   :  { %643 = vmatpush2.bf16.msra.mxu0 %v3220_v11  ;;  %686 = vmatpush2.bf16.msra.mxu1 %v3223_v12  ;;  %v3321_v11 = vld [vmem:[#allocation6 + $0x124] ss:$16 sps:$4 sm:$0xff]  }
  0xf0   :  { %644 = vmatprep.subr.bf16.mxu0 %v3228_v13  ;;  %687 = vmatprep.subr.bf16.mxu1 %v3231_v14  ;;  %v3324_v12 = vld [vmem:[#allocation6 + $0x324] ss:$16 sps:$4 sm:$0xff]   ;;  %v3319_v13 = vld [vmem:[#allocation6 + $0x120] ss:$16 sps:$4 sm:$0xff]  }
  0xf1   :  { %v3322_v14 = vld [vmem:[#allocation6 + $0x320] ss:$16 sps:$4 sm:$0xff]  }
  0xf3   :  { %645 = vmatpush2.bf16.msra.mxu0 %v3226_v15  ;;  %688 = vmatpush2.bf16.msra.mxu1 %v3229_v16  ;;  %v3327_v15 = vld [vmem:[#allocation6 + $0x104] ss:$16 sps:$4 sm:$0xff]  }
  0xf4   :  { %1480 = vmatprep.subr.bf16.mxu0 %v3237_v19  ;;  %1523 = vmatprep.subr.bf16.mxu1 %v3240_v21  ;;  %v3330_v16 = vld [vmem:[#allocation6 + $0x304] ss:$16 sps:$4 sm:$0xff]   ;;  %v3333_v19 = vld [vmem:[#allocation6 + $0xec] ss:$16 sps:$4 sm:$0xff]  }
  0xf6   :  { %647 = vmatmul.mubr.bf16.vlgmr.msra.gmra.mxu0 %v3232_v17  ;;  %690 = vmatmul.mubr.bf16.vlgmr.msra.gmra.mxu1 %v3232_v17  ;;  %v3325_v17 = vld [vmem:[#allocation6 + $0x100] ss:$16 sps:$4 sm:$0xff]  }
  0xf7   :  { %1481 = vmatpush1.bf16.msra.mxu0 %v3235_v18  ;;  %1524 = vmatpush1.bf16.msra.mxu1 %v3238_v20  ;;  %v3328_v18 = vld [vmem:[#allocation6 + $0x300] ss:$16 sps:$4 sm:$0xff]   ;;  %v3336_v20 = vld [vmem:[#allocation6 + $0x2ec] ss:$16 sps:$4 sm:$0xff]  }
  0xf8   :  { %1482 = vmatprep.subr.bf16.mxu0 %v3243_v22  ;;  %1525 = vmatprep.subr.bf16.mxu1 %v3246_v23 }
  0xfb   :  { %1483 = vmatpush1.bf16.msra.mxu0 %v3241_v24  ;;  %1526 = vmatpush1.bf16.msra.mxu1 %v3244_v25 }
  0xfc   :  { %1484 = vmatprep.subr.bf16.mxu0 %v3249_v26  ;;  %1527 = vmatprep.subr.bf16.mxu1 %v3252_v27 }
  0xff   :  { %1485 = vmatpush1.bf16.msra.mxu0 %v3247_v28  ;;  %1528 = vmatpush1.bf16.msra.mxu1 %v3250_v29 }
 0x100   :  { %1486 = vmatprep.subr.bf16.mxu0 %v3255_v30  ;;  %1529 = vmatprep.subr.bf16.mxu1 %v3258_v31 }
 0x103   :  { %1487 = vmatpush1.bf16.msra.mxu0 %v3253_v32  ;;  %1530 = vmatpush1.bf16.msra.mxu1 %v3256_v33 }
 0x104   :  { %1488 = vmatprep.subr.bf16.mxu0 %v3261_v34  ;;  %1531 = vmatprep.subr.bf16.mxu1 %v3264_v35 }
 0x107   :  { %1489 = vmatpush1.bf16.msra.mxu0 %v3259_v36  ;;  %1532 = vmatpush1.bf16.msra.mxu1 %v3262_v37 }
 0x108   :  { %1490 = vmatprep.subr.bf16.mxu0 %v3267_v38  ;;  %1533 = vmatprep.subr.bf16.mxu1 %v3270_v39 }
 0x10b   :  { %1491 = vmatpush1.bf16.msra.mxu0 %v3265_v40  ;;  %1534 = vmatpush1.bf16.msra.mxu1 %v3268_v41 }
 0x10c   :  { %1492 = vmatprep.subr.bf16.mxu0 %v3273_v42  ;;  %1535 = vmatprep.subr.bf16.mxu1 %v3276_v43 }
 0x10f   :  { %1493 = vmatpush1.bf16.msra.mxu0 %v3271_v44  ;;  %1536 = vmatpush1.bf16.msra.mxu1 %v3274_v45 }
 0x110   :  { %1494 = vmatprep.subr.bf16.mxu0 %v3279_v46  ;;  %1537 = vmatprep.subr.bf16.mxu1 %v3282_v47 }
 0x113   :  { %1495 = vmatpush1.bf16.msra.mxu0 %v3277_v48  ;;  %1538 = vmatpush1.bf16.msra.mxu1 %v3280_v49 }
 0x114   :  { %1496 = vmatprep.subr.bf16.mxu0 %v3285_v50  ;;  %1539 = vmatprep.subr.bf16.mxu1 %v3288_v51 }
 0x117   :  { %1497 = vmatpush2.bf16.msra.mxu0 %v3283_v52  ;;  %1540 = vmatpush2.bf16.msra.mxu1 %v3286_v53 }
 0x118   :  { %1498 = vmatprep.subr.bf16.mxu0 %v3291_v54  ;;  %1541 = vmatprep.subr.bf16.mxu1 %v3294_v55  ;;  %v3331_v55 = vld [vmem:[#allocation6 + $0xe8] ss:$16 sps:$4 sm:$0xff]  }
 0x11b   :  { %1499 = vmatpush2.bf16.msra.mxu0 %v3289_v56  ;;  %1542 = vmatpush2.bf16.msra.mxu1 %v3292_v57  ;;  %v3334_v56 = vld [vmem:[#allocation6 + $0x2e8] ss:$16 sps:$4 sm:$0xff]  }
 0x11c   :  { %1500 = vmatprep.subr.bf16.mxu0 %v3297_v58  ;;  %1543 = vmatprep.subr.bf16.mxu1 %v3300_v59  ;;  %v3339_v59 = vld [vmem:[#allocation6 + $0xcc] ss:$16 sps:$4 sm:$0xff]  }
 0x11f   :  { %1501 = vmatpush2.bf16.msra.mxu0 %v3295_v60  ;;  %1544 = vmatpush2.bf16.msra.mxu1 %v3298_v61  ;;  %v3342_v60 = vld [vmem:[#allocation6 + $0x2cc] ss:$16 sps:$4 sm:$0xff]   ;;  %v3337_v61 = vld [vmem:[#allocation6 + $0xc8] ss:$16 sps:$4 sm:$0xff]  }
 0x120   :  { %1502 = vmatprep.subr.bf16.mxu0 %v3303_v62  ;;  %1545 = vmatprep.subr.bf16.mxu1 %v3306_v63  ;;  %v3340_v62 = vld [vmem:[#allocation6 + $0x2c8] ss:$16 sps:$4 sm:$0xff]   ;;  %v3345_v63 = vld [vmem:[#allocation6 + $0xac] ss:$16 sps:$4 sm:$0xff]  }
 0x123   :  { %1503 = vmatpush2.bf16.msra.mxu0 %v3301_v0  ;;  %1546 = vmatpush2.bf16.msra.mxu1 %v3304_v1  ;;  %v3348_v0 = vld [vmem:[#allocation6 + $0x2ac] ss:$16 sps:$4 sm:$0xff]   ;;  %v3343_v1 = vld [vmem:[#allocation6 + $0xa8] ss:$16 sps:$4 sm:$0xff]  }
 0x124   :  { %1504 = vmatprep.subr.bf16.mxu0 %v3309_v2  ;;  %1547 = vmatprep.subr.bf16.mxu1 %v3312_v3  ;;  %v3346_v2 = vld [vmem:[#allocation6 + $0x2a8] ss:$16 sps:$4 sm:$0xff]   ;;  %v3351_v3 = vld [vmem:[#allocation6 + $0x8c] ss:$16 sps:$4 sm:$0xff]  }
 0x127   :  { %1505 = vmatpush2.bf16.msra.mxu0 %v3307_v4  ;;  %1548 = vmatpush2.bf16.msra.mxu1 %v3310_v5  ;;  %v3354_v4 = vld [vmem:[#allocation6 + $0x28c] ss:$16 sps:$4 sm:$0xff]   ;;  %v3349_v5 = vld [vmem:[#allocation6 + $0x88] ss:$16 sps:$4 sm:$0xff]  }
 0x128   :  { %1506 = vmatprep.subr.bf16.mxu0 %v3315_v6  ;;  %1549 = vmatprep.subr.bf16.mxu1 %v3318_v7  ;;  %v3352_v6 = vld [vmem:[#allocation6 + $0x288] ss:$16 sps:$4 sm:$0xff]   ;;  %v3357_v7 = vld [vmem:[#allocation6 + $0x6c] ss:$16 sps:$4 sm:$0xff]  }
 0x12b   :  { %1507 = vmatpush2.bf16.msra.mxu0 %v3313_v8  ;;  %1550 = vmatpush2.bf16.msra.mxu1 %v3316_v10  ;;  %v3360_v8 = vld [vmem:[#allocation6 + $0x26c] ss:$16 sps:$4 sm:$0xff]   ;;  %v3355_v10 = vld [vmem:[#allocation6 + $0x68] ss:$16 sps:$4 sm:$0xff]  }
 0x12c   :  { %1508 = vmatprep.subr.bf16.mxu0 %v3321_v11  ;;  %1551 = vmatprep.subr.bf16.mxu1 %v3324_v12  ;;  %v3358_v11 = vld [vmem:[#allocation6 + $0x268] ss:$16 sps:$4 sm:$0xff]   ;;  %v3363_v12 = vld [vmem:[#allocation6 + $0x4c] ss:$16 sps:$4 sm:$0xff]  }
 0x12f   :  { %1509 = vmatpush2.bf16.msra.mxu0 %v3319_v13  ;;  %1552 = vmatpush2.bf16.msra.mxu1 %v3322_v14  ;;  %v3366_v13 = vld [vmem:[#allocation6 + $0x24c] ss:$16 sps:$4 sm:$0xff]   ;;  %v3361_v14 = vld [vmem:[#allocation6 + $0x48] ss:$16 sps:$4 sm:$0xff]  }
 0x130   :  { %1510 = vmatprep.subr.bf16.mxu0 %v3327_v15  ;;  %1553 = vmatprep.subr.bf16.mxu1 %v3330_v16  ;;  %v3364_v15 = vld [vmem:[#allocation6 + $0x248] ss:$16 sps:$4 sm:$0xff]   ;;  %v3369_v16 = vld [vmem:[#allocation6 + $0x2c] ss:$16 sps:$4 sm:$0xff]  }
 0x133   :  { %1511 = vmatpush2.bf16.msra.mxu0 %v3325_v17  ;;  %1554 = vmatpush2.bf16.msra.mxu1 %v3328_v18  ;;  %v3372_v17 = vld [vmem:[#allocation6 + $0x22c] ss:$16 sps:$4 sm:$0xff]   ;;  %v3367_v18 = vld [vmem:[#allocation6 + $0x28] ss:$16 sps:$4 sm:$0xff]  }
 0x134   :  { %1566 = vmatprep.subr.bf16.mxu0 %v3333_v19  ;;  %1609 = vmatprep.subr.bf16.mxu1 %v3336_v20  ;;  %v3370_v19 = vld [vmem:[#allocation6 + $0x228] ss:$16 sps:$4 sm:$0xff]   ;;  %v3375_v20 = vld [vmem:[#allocation6 + $0xc] ss:$16 sps:$4 sm:$0xff]  }
 0x176   :  { %v166_v21 = vpop.f32.mrf.mxu0  ;;  %v209_v22 = vpop.f32.mrf.mxu1 }
 0x178   :  { %v168_v23 = vpop.f32.mrf.mxu0  ;;  %v211_v24 = vpop.f32.mrf.mxu1 }
 0x17a   :  { %v170_v25 = vpop.f32.mrf.mxu0  ;;  %v213_v26 = vpop.f32.mrf.mxu1 }
 0x17c   :  { %v172_v27 = vpop.f32.mrf.mxu0  ;;  %v215_v28 = vpop.f32.mrf.mxu1 }
 0x1b6   :  { %v648_v29 = vpop.f32.mrf.mxu0  ;;  %v691_v30 = vpop.f32.mrf.mxu1 }
 0x1b7   :  { %v649_v35 = vadd.f32 %v648_v29, %v166_v21  ;;  %v692_v36 = vadd.f32 %v691_v30, %v209_v22  ;;  %v3378_v21 = vld [vmem:[#allocation6 + $0x20c] ss:$16 sps:$4 sm:$0xff]   ;;  %v3373_v22 = vld [vmem:[#allocation6 + $0x8] ss:$16 sps:$4 sm:$0xff]  }
 0x1b8   :  { %v650_v31 = vpop.f32.mrf.mxu0  ;;  %v693_v32 = vpop.f32.mrf.mxu1  ;;  %v3390_v29 = vld [vmem:[#allocation6 + $0x3cc] ss:$16 sps:$4 sm:$0xff]   ;;  %v3385_v30 = vld [vmem:[#allocation6 + $0x1c8] ss:$16 sps:$4 sm:$0xff]  }
 0x1b9   :  { %v651_v39 = vadd.f32 %v650_v31, %v168_v23  ;;  %v694_v40 = vadd.f32 %v693_v32, %v211_v24  ;;  %v3376_v23 = vld [vmem:[#allocation6 + $0x208] ss:$16 sps:$4 sm:$0xff]   ;;  %v3381_v24 = vld [vmem:[#allocation6 + $0x1ec] ss:$16 sps:$4 sm:$0xff]  }
 0x1ba   :  { %v652_v33 = vpop.f32.mrf.mxu0  ;;  %v695_v34 = vpop.f32.mrf.mxu1  ;;  %v3388_v31 = vld [vmem:[#allocation6 + $0x3c8] ss:$16 sps:$4 sm:$0xff]   ;;  %v3393_v32 = vld [vmem:[#allocation6 + $0x1ac] ss:$16 sps:$4 sm:$0xff]  }
 0x1bb   :  { %v653_v37 = vadd.f32 %v652_v33, %v170_v25  ;;  %v696_v38 = vadd.f32 %v695_v34, %v213_v26  ;;  %v3384_v25 = vld [vmem:[#allocation6 + $0x3ec] ss:$16 sps:$4 sm:$0xff]   ;;  %v3379_v26 = vld [vmem:[#allocation6 + $0x1e8] ss:$16 sps:$4 sm:$0xff]  }
 0x1bc   :  { %v654_v41 = vpop.f32.mrf.mxu0  ;;  %v697_v42 = vpop.f32.mrf.mxu1  ;;  %v3396_v33 = vld [vmem:[#allocation6 + $0x3ac] ss:$16 sps:$4 sm:$0xff]   ;;  %v3391_v34 = vld [vmem:[#allocation6 + $0x1a8] ss:$16 sps:$4 sm:$0xff]  }
 0x1bd   :  { %v700_v43 = vpack.c.bf16 %v653_v37, %v649_v35  ;;  %v702_v44 = vpack.c.bf16 %v696_v38, %v692_v36  ;;  %v655_v45 = vadd.f32 %v654_v41, %v172_v27  ;;  %v698_v46 = vadd.f32 %v697_v42, %v215_v28  ;;  %v3382_v27 = vld [vmem:[#allocation6 + $0x3e8] ss:$16 sps:$4 sm:$0xff]   ;;  %v3387_v28 = vld [vmem:[#allocation6 + $0x1cc] ss:$16 sps:$4 sm:$0xff]  }
 0x1be   :  { %v3394_v35 = vld [vmem:[#allocation6 + $0x3a8] ss:$16 sps:$4 sm:$0xff]   ;;  %v3399_v36 = vld [vmem:[#allocation6 + $0x18c] ss:$16 sps:$4 sm:$0xff]  }
 0x1bf   :  { %v701_v47 = vpack.c.bf16 %v655_v45, %v651_v39  ;;  %v703_v48 = vpack.c.bf16 %v698_v46, %v694_v40  ;;  %v704_v49 = vmul.bf16 1045249613, %v700_v43  ;;  %v706_v50 = vmul.bf16 1045249613, %v702_v44  ;;  %v3402_v37 = vld [vmem:[#allocation6 + $0x38c] ss:$16 sps:$4 sm:$0xff]  }
 0x1c0   :  { %v3397_v38 = vld [vmem:[#allocation6 + $0x188] ss:$16 sps:$4 sm:$0xff]   ;;  %v3405_v40 = vld [vmem:[#allocation6 + $0x16c] ss:$16 sps:$4 sm:$0xff]  }
 0x1c1   :  { %v705_v51 = vmul.bf16 1045249613, %v701_v47  ;;  %v707_v52 = vmul.bf16 1045249613, %v703_v48  ;;  %v3801_v57 = vmax.bf16 %v704_v49, %v700_v43  ;;  %v3803_v58 = vmax.bf16 %v706_v50, %v702_v44  ;;  %v3400_v39 = vld [vmem:[#allocation6 + $0x388] ss:$16 sps:$4 sm:$0xff]  }
 0x1c2   :  { %v3408_v41 = vld [vmem:[#allocation6 + $0x36c] ss:$16 sps:$4 sm:$0xff]   ;;  %v3403_v42 = vld [vmem:[#allocation6 + $0x168] ss:$16 sps:$4 sm:$0xff]  }
 0x1c3   :  { %v709_v53 = vmax.bf16 %v705_v51, %v701_v47  ;;  %v711_v54 = vmax.bf16 %v707_v52, %v703_v48  ;;  %v3406_v43 = vld [vmem:[#allocation6 + $0x368] ss:$16 sps:$4 sm:$0xff]   ;;  %v3411_v44 = vld [vmem:[#allocation6 + $0x14c] ss:$16 sps:$4 sm:$0xff]  }
 0x1c4   :  { %v3414_v45 = vld [vmem:[#allocation6 + $0x34c] ss:$16 sps:$4 sm:$0xff]   ;;  %v3409_v46 = vld [vmem:[#allocation6 + $0x148] ss:$16 sps:$4 sm:$0xff]  }
 0x1c5   :  { %1512 = vmatprep.mubr.bf16.mxu0 %v709_v53  ;;  %1555 = vmatprep.mubr.bf16.mxu1 %v711_v54  ;;  %v3412_v47 = vld [vmem:[#allocation6 + $0x348] ss:$16 sps:$4 sm:$0xff]   ;;  %v3417_v48 = vld [vmem:[#allocation6 + $0x12c] ss:$16 sps:$4 sm:$0xff]  }
 0x1c6   :  { %1513 = vmatmul.mubr.bf16.vlgmr.msra.gmra.mxu0 %v3801_v57  ;;  %1556 = vmatmul.mubr.bf16.vlgmr.msra.gmra.mxu1 %v3803_v58  ;;  %v3420_v49 = vld [vmem:[#allocation6 + $0x32c] ss:$16 sps:$4 sm:$0xff]   ;;  %v3415_v50 = vld [vmem:[#allocation6 + $0x128] ss:$16 sps:$4 sm:$0xff]  }
 0x1c7   :  { %1567 = vmatpush1.bf16.msra.mxu0 %v3331_v55  ;;  %1610 = vmatpush1.bf16.msra.mxu1 %v3334_v56  ;;  %v3418_v51 = vld [vmem:[#allocation6 + $0x328] ss:$16 sps:$4 sm:$0xff]   ;;  %v3423_v52 = vld [vmem:[#allocation6 + $0x10c] ss:$16 sps:$4 sm:$0xff]   ;;  %v3429_v56 = vld [vmem:[#allocation7 + $0xe4] ss:$16 sps:$4 sm:$0xff]  }
 0x1c8   :  { %1598 = vmatprep.mubr.bf16.mxu0 %v709_v53  ;;  %1641 = vmatprep.mubr.bf16.mxu1 %v711_v54  ;;  %v3426_v53 = vld [vmem:[#allocation6 + $0x30c] ss:$16 sps:$4 sm:$0xff]   ;;  %v3421_v54 = vld [vmem:[#allocation6 + $0x108] ss:$16 sps:$4 sm:$0xff]  }
 0x1c9   :  { %1568 = vmatprep.subr.bf16.mxu0 %v3339_v59  ;;  %1611 = vmatprep.subr.bf16.mxu1 %v3342_v60  ;;  %v3424_v55 = vld [vmem:[#allocation6 + $0x308] ss:$16 sps:$4 sm:$0xff]   ;;  %v3427_v59 = vld [vmem:[#allocation7 + $0xe0] ss:$16 sps:$4 sm:$0xff]   ;;  %v3432_v60 = vld [vmem:[#allocation7 + $0xc4] ss:$16 sps:$4 sm:$0xff]  }
 0x1cb   :  { %1569 = vmatpush1.bf16.msra.mxu0 %v3337_v61  ;;  %1612 = vmatpush1.bf16.msra.mxu1 %v3340_v62  ;;  %v3430_v61 = vld [vmem:[#allocation7 + $0xc0] ss:$16 sps:$4 sm:$0xff]   ;;  %v3435_v62 = vld [vmem:[#allocation7 + $0xa4] ss:$16 sps:$4 sm:$0xff]  }
 0x1cc   :  { %1570 = vmatprep.subr.bf16.mxu0 %v3345_v63  ;;  %1613 = vmatprep.subr.bf16.mxu1 %v3348_v0  ;;  %v3433_v63 = vld [vmem:[#allocation7 + $0xa0] ss:$16 sps:$4 sm:$0xff]   ;;  %v3438_v0 = vld [vmem:[#allocation7 + $0x84] ss:$16 sps:$4 sm:$0xff]  }
 0x1cf   :  { %1571 = vmatpush1.bf16.msra.mxu0 %v3343_v1  ;;  %1614 = vmatpush1.bf16.msra.mxu1 %v3346_v2  ;;  %v3436_v1 = vld [vmem:[#allocation7 + $0x80] ss:$16 sps:$4 sm:$0xff]   ;;  %v3441_v2 = vld [vmem:[#allocation7 + $0x64] ss:$16 sps:$4 sm:$0xff]  }
 0x1d0   :  { %1572 = vmatprep.subr.bf16.mxu0 %v3351_v3  ;;  %1615 = vmatprep.subr.bf16.mxu1 %v3354_v4  ;;  %v3439_v3 = vld [vmem:[#allocation7 + $0x60] ss:$16 sps:$4 sm:$0xff]  }
 0x1d1   :  { %v3475_v4 = vld [vmem:[#allocation7 + $0x2e0] ss:$16 sps:$4 sm:$0xff]  }
 0x1d3   :  { %1573 = vmatpush1.bf16.msra.mxu0 %v3349_v5  ;;  %1616 = vmatpush1.bf16.msra.mxu1 %v3352_v6  ;;  %v3477_v5 = vld [vmem:[#allocation7 + $0x2e4] ss:$16 sps:$4 sm:$0xff]  }
 0x1d4   :  { %1574 = vmatprep.subr.bf16.mxu0 %v3357_v7  ;;  %1617 = vmatprep.subr.bf16.mxu1 %v3360_v8  ;;  %v3447_v6 = vld [vmem:[#allocation7 + $0x24] ss:$16 sps:$4 sm:$0xff]   ;;  %v3481_v7 = vld [vmem:[#allocation7 + $0x2c0] ss:$16 sps:$4 sm:$0xff]  }
 0x1d5   :  { %v3483_v8 = vld [vmem:[#allocation7 + $0x2c4] ss:$16 sps:$4 sm:$0xff]  }
 0x1d7   :  { %1575 = vmatpush1.bf16.msra.mxu0 %v3355_v10  ;;  %1618 = vmatpush1.bf16.msra.mxu1 %v3358_v11  ;;  %v3445_v10 = vld [vmem:[#allocation7 + $0x20] ss:$16 sps:$4 sm:$0xff]   ;;  %v3450_v11 = vld [vmem:[#allocation7 + $0x4] ss:$16 sps:$4 sm:$0xff]  }
 0x1d8   :  { %1576 = vmatprep.subr.bf16.mxu0 %v3363_v12  ;;  %1619 = vmatprep.subr.bf16.mxu1 %v3366_v13  ;;  %v3487_v12 = vld [vmem:[#allocation7 + $0x2a0] ss:$16 sps:$4 sm:$0xff]   ;;  %v3489_v13 = vld [vmem:[#allocation7 + $0x2a4] ss:$16 sps:$4 sm:$0xff]  }
 0x1db   :  { %1577 = vmatpush1.bf16.msra.mxu0 %v3361_v14  ;;  %1620 = vmatpush1.bf16.msra.mxu1 %v3364_v15  ;;  %v3448_v14 = vld [vmem:[#allocation7] ss:$16 sps:$4 sm:$0xff]   ;;  %v3453_v15 = vld [vmem:[#allocation7 + $0x1e4] ss:$16 sps:$4 sm:$0xff]  }
 0x1dc   :  { %1578 = vmatprep.subr.bf16.mxu0 %v3369_v16  ;;  %1621 = vmatprep.subr.bf16.mxu1 %v3372_v17  ;;  %v3493_v16 = vld [vmem:[#allocation7 + $0x280] ss:$16 sps:$4 sm:$0xff]   ;;  %v3495_v17 = vld [vmem:[#allocation7 + $0x284] ss:$16 sps:$4 sm:$0xff]  }
 0x1df   :  { %1579 = vmatpush1.bf16.msra.mxu0 %v3367_v18  ;;  %1622 = vmatpush1.bf16.msra.mxu1 %v3370_v19  ;;  %v3451_v18 = vld [vmem:[#allocation7 + $0x1e0] ss:$16 sps:$4 sm:$0xff]   ;;  %v3456_v19 = vld [vmem:[#allocation7 + $0x1c4] ss:$16 sps:$4 sm:$0xff]  }
 0x1e0   :  { %1580 = vmatprep.subr.bf16.mxu0 %v3375_v20  ;;  %1623 = vmatprep.subr.bf16.mxu1 %v3378_v21  ;;  %v3499_v20 = vld [vmem:[#allocation7 + $0x260] ss:$16 sps:$4 sm:$0xff]   ;;  %v3501_v21 = vld [vmem:[#allocation7 + $0x264] ss:$16 sps:$4 sm:$0xff]  }
 0x1e3   :  { %1581 = vmatpush1.bf16.msra.mxu0 %v3373_v22  ;;  %1624 = vmatpush1.bf16.msra.mxu1 %v3376_v23  ;;  %v3454_v22 = vld [vmem:[#allocation7 + $0x1c0] ss:$16 sps:$4 sm:$0xff]   ;;  %v3459_v23 = vld [vmem:[#allocation7 + $0x1a4] ss:$16 sps:$4 sm:$0xff]  }
 0x1e4   :  { %1582 = vmatprep.subr.bf16.mxu0 %v3381_v24  ;;  %1625 = vmatprep.subr.bf16.mxu1 %v3384_v25  ;;  %v3505_v24 = vld [vmem:[#allocation7 + $0x240] ss:$16 sps:$4 sm:$0xff]   ;;  %v3507_v25 = vld [vmem:[#allocation7 + $0x244] ss:$16 sps:$4 sm:$0xff]  }
 0x1e7   :  { %1583 = vmatpush2.bf16.msra.mxu0 %v3379_v26  ;;  %1626 = vmatpush2.bf16.msra.mxu1 %v3382_v27  ;;  %v3457_v26 = vld [vmem:[#allocation7 + $0x1a0] ss:$16 sps:$4 sm:$0xff]   ;;  %v3462_v27 = vld [vmem:[#allocation7 + $0x184] ss:$16 sps:$4 sm:$0xff]  }
 0x1e8   :  { %1584 = vmatprep.subr.bf16.mxu0 %v3387_v28  ;;  %1627 = vmatprep.subr.bf16.mxu1 %v3390_v29  ;;  %v3511_v28 = vld [vmem:[#allocation7 + $0x220] ss:$16 sps:$4 sm:$0xff]   ;;  %v3513_v29 = vld [vmem:[#allocation7 + $0x224] ss:$16 sps:$4 sm:$0xff]  }
 0x1eb   :  { %1585 = vmatpush2.bf16.msra.mxu0 %v3385_v30  ;;  %1628 = vmatpush2.bf16.msra.mxu1 %v3388_v31  ;;  %v3460_v30 = vld [vmem:[#allocation7 + $0x180] ss:$16 sps:$4 sm:$0xff]   ;;  %v3465_v31 = vld [vmem:[#allocation7 + $0x164] ss:$16 sps:$4 sm:$0xff]  }
 0x1ec   :  { %1586 = vmatprep.subr.bf16.mxu0 %v3393_v32  ;;  %1629 = vmatprep.subr.bf16.mxu1 %v3396_v33  ;;  %v3517_v32 = vld [vmem:[#allocation7 + $0x200] ss:$16 sps:$4 sm:$0xff]   ;;  %v3519_v33 = vld [vmem:[#allocation7 + $0x204] ss:$16 sps:$4 sm:$0xff]  }
 0x1ef   :  { %1587 = vmatpush2.bf16.msra.mxu0 %v3391_v34  ;;  %1630 = vmatpush2.bf16.msra.mxu1 %v3394_v35  ;;  %v3463_v34 = vld [vmem:[#allocation7 + $0x160] ss:$16 sps:$4 sm:$0xff]   ;;  %v3468_v35 = vld [vmem:[#allocation7 + $0x144] ss:$16 sps:$4 sm:$0xff]  }
 0x1f0   :  { %1588 = vmatprep.subr.bf16.mxu0 %v3399_v36  ;;  %1631 = vmatprep.subr.bf16.mxu1 %v3402_v37  ;;  %v3523_v36 = vld [vmem:[#allocation7 + $0x3e0] ss:$16 sps:$4 sm:$0xff]   ;;  %v3525_v37 = vld [vmem:[#allocation7 + $0x3e4] ss:$16 sps:$4 sm:$0xff]  }
 0x1f3   :  { %1589 = vmatpush2.bf16.msra.mxu0 %v3397_v38  ;;  %1632 = vmatpush2.bf16.msra.mxu1 %v3400_v39  ;;  %v3466_v38 = vld [vmem:[#allocation7 + $0x140] ss:$16 sps:$4 sm:$0xff]   ;;  %v3471_v39 = vld [vmem:[#allocation7 + $0x124] ss:$16 sps:$4 sm:$0xff]  }
 0x1f4   :  { %1590 = vmatprep.subr.bf16.mxu0 %v3405_v40  ;;  %1633 = vmatprep.subr.bf16.mxu1 %v3408_v41  ;;  %v3529_v40 = vld [vmem:[#allocation7 + $0x3c0] ss:$16 sps:$4 sm:$0xff]   ;;  %v3531_v41 = vld [vmem:[#allocation7 + $0x3c4] ss:$16 sps:$4 sm:$0xff]  }
 0x1f7   :  { %1591 = vmatpush2.bf16.msra.mxu0 %v3403_v42  ;;  %1634 = vmatpush2.bf16.msra.mxu1 %v3406_v43  ;;  %v3469_v42 = vld [vmem:[#allocation7 + $0x120] ss:$16 sps:$4 sm:$0xff]   ;;  %v3474_v43 = vld [vmem:[#allocation7 + $0x104] ss:$16 sps:$4 sm:$0xff]  }
 0x1f8   :  { %1592 = vmatprep.subr.bf16.mxu0 %v3411_v44  ;;  %1635 = vmatprep.subr.bf16.mxu1 %v3414_v45  ;;  %v3535_v44 = vld [vmem:[#allocation7 + $0x3a0] ss:$16 sps:$4 sm:$0xff]   ;;  %v3537_v45 = vld [vmem:[#allocation7 + $0x3a4] ss:$16 sps:$4 sm:$0xff]  }
 0x1fb   :  { %1593 = vmatpush2.bf16.msra.mxu0 %v3409_v46  ;;  %1636 = vmatpush2.bf16.msra.mxu1 %v3412_v47  ;;  %v3472_v46 = vld [vmem:[#allocation7 + $0x100] ss:$16 sps:$4 sm:$0xff]   ;;  %v3480_v47 = vld [vmem:[#allocation7 + $0xec] ss:$16 sps:$4 sm:$0xff]  }
 0x1fc   :  { %1594 = vmatprep.subr.bf16.mxu0 %v3417_v48  ;;  %1637 = vmatprep.subr.bf16.mxu1 %v3420_v49  ;;  %v3541_v48 = vld [vmem:[#allocation7 + $0x380] ss:$16 sps:$4 sm:$0xff]   ;;  %v3543_v49 = vld [vmem:[#allocation7 + $0x384] ss:$16 sps:$4 sm:$0xff]  }
 0x1ff   :  { %1595 = vmatpush2.bf16.msra.mxu0 %v3415_v50  ;;  %1638 = vmatpush2.bf16.msra.mxu1 %v3418_v51  ;;  %v3549_v50 = vld [vmem:[#allocation7 + $0x364] ss:$16 sps:$4 sm:$0xff]   ;;  %v3547_v51 = vld [vmem:[#allocation7 + $0x360] ss:$16 sps:$4 sm:$0xff]  }
 0x200   :  { %1596 = vmatprep.subr.bf16.mxu0 %v3423_v52  ;;  %1639 = vmatprep.subr.bf16.mxu1 %v3426_v53  ;;  %v3555_v52 = vld [vmem:[#allocation7 + $0x344] ss:$16 sps:$4 sm:$0xff]   ;;  %v3553_v53 = vld [vmem:[#allocation7 + $0x340] ss:$16 sps:$4 sm:$0xff]  }
 0x203   :  { %1597 = vmatpush2.bf16.msra.mxu0 %v3421_v54  ;;  %1640 = vmatpush2.bf16.msra.mxu1 %v3424_v55  ;;  %v3561_v54 = vld [vmem:[#allocation7 + $0x324] ss:$16 sps:$4 sm:$0xff]   ;;  %v3559_v55 = vld [vmem:[#allocation7 + $0x320] ss:$16 sps:$4 sm:$0xff]  }
 0x204   :  { %2490 = vmatprep.subr.bf16.mxu0 %v3429_v56  ;;  %2533 = vmatprep.subr.bf16.mxu1 %v3477_v5  ;;  %v3567_v56 = vld [vmem:[#allocation7 + $0x304] ss:$16 sps:$4 sm:$0xff]  }
 0x206   :  { %1599 = vmatmul.mubr.bf16.vlgmr.msra.gmra.mxu0 %v3801_v57  ;;  %1642 = vmatmul.mubr.bf16.vlgmr.msra.gmra.mxu1 %v3803_v58  ;;  %v3444_v57 = vld [vmem:[#allocation7 + $0x44] ss:$16 sps:$4 sm:$0xff]   ;;  %v3442_v58 = vld [vmem:[#allocation7 + $0x40] ss:$16 sps:$4 sm:$0xff]  }
 0x207   :  { %2491 = vmatpush1.bf16.msra.mxu0 %v3427_v59  ;;  %2534 = vmatpush1.bf16.msra.mxu1 %v3475_v4  ;;  %v3565_v59 = vld [vmem:[#allocation7 + $0x300] ss:$16 sps:$4 sm:$0xff]  }
 0x208   :  { %2492 = vmatprep.subr.bf16.mxu0 %v3432_v60  ;;  %2535 = vmatprep.subr.bf16.mxu1 %v3483_v8  ;;  %v3573_v60 = vld [vmem:[#allocation7 + $0x2ec] ss:$16 sps:$4 sm:$0xff]  }
 0x20b   :  { %2493 = vmatpush1.bf16.msra.mxu0 %v3430_v61  ;;  %2536 = vmatpush1.bf16.msra.mxu1 %v3481_v7  ;;  %v3713_v61 = vmov 1966171168  }
 0x20c   :  { %2494 = vmatprep.subr.bf16.mxu0 %v3435_v62  ;;  %2537 = vmatprep.subr.bf16.mxu1 %v3489_v13  ;;  %v1667_v62 = vunpack.c.l.s4 %v3713_v61 }
 0x20f   :  { %2495 = vmatpush1.bf16.msra.mxu0 %v3433_v63  ;;  %2538 = vmatpush1.bf16.msra.mxu1 %v3487_v12  ;;  %v3810_v63 = vshrl.u32 %v89_v9, 7 }
 0x210   :  { %2496 = vmatprep.subr.bf16.mxu0 %v3438_v0  ;;  %2539 = vmatprep.subr.bf16.mxu1 %v3495_v17  ;;  %v1668_v0 = vunpack.c.0.s8 %v1667_v62 }
 0x211   :  { %v3825_v9 = vsub.s32 0, %v3810_v63 }
 0x213   :  { %2497 = vmatpush1.bf16.msra.mxu0 %v3436_v1  ;;  %2540 = vmatpush1.bf16.msra.mxu1 %v3493_v16  ;;  %v2990_v1 = vld.sshfl [vmem:[%s3874_s5] sm:$0x33 pattern:$0x75316420] }
 0x214   :  { %2498 = vmatprep.subr.bf16.mxu0 %v3441_v2  ;;  %2541 = vmatprep.subr.bf16.mxu1 %v3501_v21  ;;  %v3816_v2 = vsub.s32 %v1668_v0, %v3810_v63 }
 0x216   :  { %v3819_v4 = vrot.slane %v2990_v1, %v3816_v2 }
 0x217   :  { %2499 = vmatpush1.bf16.msra.mxu0 %v3439_v3  ;;  %2542 = vmatpush1.bf16.msra.mxu1 %v3499_v20  ;;  %v1665_v3 = vcombine.high %v2990_v1, %v2990_v1 }
 0x218   :  { %2500 = vmatprep.subr.bf16.mxu0 %v3444_v57  ;;  %2543 = vmatprep.subr.bf16.mxu1 %v3507_v25 }
 0x219   :  { %v3822_v5 = vrot.slane %v1665_v3, %v3816_v2  ;;  %v3556_v3 = vld [vmem:[#allocation7 + $0x148] ss:$16 sps:$4 sm:$0xff]  }
 0x21b   :  { %2501 = vmatpush1.bf16.msra.mxu0 %v3442_v58  ;;  %2544 = vmatpush1.bf16.msra.mxu1 %v3505_v24 }
 0x21c   :  { %2502 = vmatprep.subr.bf16.mxu0 %v3447_v6  ;;  %2545 = vmatprep.subr.bf16.mxu1 %v3513_v29  ;;  %v1683_v6 = vpack.i.b16 %v3819_v4, %v3819_v4 }
 0x21f   :  { %2503 = vmatpush1.bf16.msra.mxu0 %v3445_v10  ;;  %2546 = vmatpush1.bf16.msra.mxu1 %v3511_v28  ;;  %v1690_v10 = vpack.i.b16 %v3822_v5, %v3822_v5  ;;  %v3478_v28 = vld [vmem:[#allocation7 + $0xe8] ss:$16 sps:$4 sm:$0xff]  }
 0x220   :  { %2504 = vmatprep.subr.bf16.mxu0 %v3450_v11  ;;  %2547 = vmatprep.subr.bf16.mxu1 %v3519_v33  ;;  %v3490_v33 = vld [vmem:[#allocation7 + $0xa8] ss:$16 sps:$4 sm:$0xff]  }
 0x221   :  { %v1695_v21 = vrot.slane %v1690_v10, %v3825_v9 }
 0x223   :  { %2505 = vmatpush1.bf16.msra.mxu0 %v3448_v14  ;;  %2548 = vmatpush1.bf16.msra.mxu1 %v3517_v32  ;;  %v3492_v32 = vld [vmem:[#allocation7 + $0xac] ss:$16 sps:$4 sm:$0xff]  }
 0x224   :  { %2506 = vmatprep.subr.bf16.mxu0 %v3453_v15  ;;  %2549 = vmatprep.subr.bf16.mxu1 %v3525_v37  ;;  %v1688_v15 = vrot.slane %v1683_v6, %v3825_v9  ;;  %v3502_v37 = vld [vmem:[#allocation7 + $0x68] ss:$16 sps:$4 sm:$0xff]   ;;  %v3564_v6 = vld [vmem:[#allocation7 + $0x12c] ss:$16 sps:$4 sm:$0xff]  }
 0x227   :  { %2507 = vmatpush2.bf16.msra.mxu0 %v3451_v18  ;;  %2550 = vmatpush2.bf16.msra.mxu1 %v3523_v36  ;;  %v3504_v36 = vld [vmem:[#allocation7 + $0x6c] ss:$16 sps:$4 sm:$0xff]  }
 0x228   :  { %2508 = vmatprep.subr.bf16.mxu0 %v3456_v19  ;;  %2551 = vmatprep.subr.bf16.mxu1 %v3531_v41  ;;  %v3514_v41 = vld [vmem:[#allocation7 + $0x28] ss:$16 sps:$4 sm:$0xff]  }
 0x22b   :  { %2509 = vmatpush2.bf16.msra.mxu0 %v3454_v22  ;;  %2552 = vmatpush2.bf16.msra.mxu1 %v3529_v40  ;;  %v3516_v40 = vld [vmem:[#allocation7 + $0x2c] ss:$16 sps:$4 sm:$0xff]  }
 0x22c   :  { %2510 = vmatprep.subr.bf16.mxu0 %v3459_v23  ;;  %2553 = vmatprep.subr.bf16.mxu1 %v3537_v45  ;;  %v3526_v45 = vld [vmem:[#allocation7 + $0x1e8] ss:$16 sps:$4 sm:$0xff]  }
 0x22f   :  { %2511 = vmatpush2.bf16.msra.mxu0 %v3457_v26  ;;  %2554 = vmatpush2.bf16.msra.mxu1 %v3535_v44  ;;  %v3528_v44 = vld [vmem:[#allocation7 + $0x1ec] ss:$16 sps:$4 sm:$0xff]  }
 0x230   :  { %2512 = vmatprep.subr.bf16.mxu0 %v3462_v27  ;;  %2555 = vmatprep.subr.bf16.mxu1 %v3543_v49  ;;  %v3538_v49 = vld [vmem:[#allocation7 + $0x1a8] ss:$16 sps:$4 sm:$0xff]  }
 0x233   :  { %2513 = vmatpush2.bf16.msra.mxu0 %v3460_v30  ;;  %2556 = vmatpush2.bf16.msra.mxu1 %v3541_v48  ;;  %v3486_v30 = vld [vmem:[#allocation7 + $0xcc] ss:$16 sps:$4 sm:$0xff]  }
 0x234   :  { %2514 = vmatprep.subr.bf16.mxu0 %v3465_v31  ;;  %2557 = vmatprep.subr.bf16.mxu1 %v3549_v50  ;;  %v3484_v31 = vld [vmem:[#allocation7 + $0xc8] ss:$16 sps:$4 sm:$0xff]   ;;  %v3540_v48 = vld [vmem:[#allocation7 + $0x1ac] ss:$16 sps:$4 sm:$0xff]  }
 0x235   :  { %v3546_v50 = vld [vmem:[#allocation7 + $0x18c] ss:$16 sps:$4 sm:$0xff]  }
 0x237   :  { %2515 = vmatpush2.bf16.msra.mxu0 %v3463_v34  ;;  %2558 = vmatpush2.bf16.msra.mxu1 %v3547_v51  ;;  %v3498_v34 = vld [vmem:[#allocation7 + $0x8c] ss:$16 sps:$4 sm:$0xff]   ;;  %v3544_v51 = vld [vmem:[#allocation7 + $0x188] ss:$16 sps:$4 sm:$0xff]  }
 0x238   :  { %2516 = vmatprep.subr.bf16.mxu0 %v3468_v35  ;;  %2559 = vmatprep.subr.bf16.mxu1 %v3555_v52  ;;  %v3496_v35 = vld [vmem:[#allocation7 + $0x88] ss:$16 sps:$4 sm:$0xff]   ;;  %v3552_v52 = vld [vmem:[#allocation7 + $0x16c] ss:$16 sps:$4 sm:$0xff]  }
 0x23b   :  { %2517 = vmatpush2.bf16.msra.mxu0 %v3466_v38  ;;  %2560 = vmatpush2.bf16.msra.mxu1 %v3553_v53  ;;  %v3510_v38 = vld [vmem:[#allocation7 + $0x4c] ss:$16 sps:$4 sm:$0xff]   ;;  %v1680_v53 = vcombine.high %v3819_v4, %v3819_v4 }
 0x23c   :  { %2518 = vmatprep.subr.bf16.mxu0 %v3471_v39  ;;  %2561 = vmatprep.subr.bf16.mxu1 %v3561_v54  ;;  %v3508_v39 = vld [vmem:[#allocation7 + $0x48] ss:$16 sps:$4 sm:$0xff]  }
 0x23d   :  { %v3550_v54 = vld [vmem:[#allocation7 + $0x168] ss:$16 sps:$4 sm:$0xff]   ;;  %v1697_v61 = vpack.i.b16 %v1680_v53, %v1680_v53 }
 0x23e   :  { %v3613_v53 = vld [vmem:[#allocation7 + $0x328] ss:$16 sps:$4 sm:$0xff]  }
 0x23f   :  { %2519 = vmatpush2.bf16.msra.mxu0 %v3469_v42  ;;  %2562 = vmatpush2.bf16.msra.mxu1 %v3559_v55  ;;  %v3522_v42 = vld [vmem:[#allocation7 + $0xc] ss:$16 sps:$4 sm:$0xff]   ;;  %v1681_v55 = vcombine.high %v3822_v5, %v3822_v5 }
 0x240   :  { %2520 = vmatprep.subr.bf16.mxu0 %v3474_v43  ;;  %2563 = vmatprep.subr.bf16.mxu1 %v3567_v56  ;;  %v3520_v43 = vld [vmem:[#allocation7 + $0x8] ss:$16 sps:$4 sm:$0xff]  }
 0x241   :  { %v1704_v1 = vpack.i.b16 %v1681_v55, %v1681_v55  ;;  %v3616_v55 = vld [vmem:[#allocation7 + $0x308] ss:$16 sps:$4 sm:$0xff]  }
 0x243   :  { %2521 = vmatpush2.bf16.msra.mxu0 %v3472_v46  ;;  %2564 = vmatpush2.bf16.msra.mxu1 %v3565_v59  ;;  %v3534_v46 = vld [vmem:[#allocation7 + $0x1cc] ss:$16 sps:$4 sm:$0xff]  }
 0x244   :  { %2576 = vmatprep.subr.bf16.mxu0 %v3480_v47  ;;  %2619 = vmatprep.subr.bf16.mxu1 %v3573_v60  ;;  %v3532_v47 = vld [vmem:[#allocation7 + $0x1c8] ss:$16 sps:$4 sm:$0xff]   ;;  %v3558_v60 = vld [vmem:[#allocation7 + $0x14c] ss:$16 sps:$4 sm:$0xff]  }
 0x286   :  { %v1514_v57 = vpop.f32.mrf.mxu0  ;;  %v1557_v58 = vpop.f32.mrf.mxu1 }
 0x287   :  { %v1558_v13 = vadd.f32 %v1557_v58, %v1514_v57 }
 0x288   :  { %v1516_v7 = vpop.f32.mrf.mxu0  ;;  %v1559_v8 = vpop.f32.mrf.mxu1 }
 0x289   :  { %v1560_v18 = vadd.f32 %v1559_v8, %v1516_v7  ;;  %v1702_v8 = vrot.slane %v1697_v61, %v3825_v9  ;;  %v3119_v61 = vld.sshfl [vmem:[%s3876_s7] sm:$0x33 pattern:$0x75316420] }
 0x28a   :  { %v1518_v11 = vpop.f32.mrf.mxu0  ;;  %v1561_v12 = vpop.f32.mrf.mxu1 }
 0x28b   :  { %v1562_v14 = vadd.f32 %v1561_v12, %v1518_v11 }
 0x28c   :  { %v1520_v16 = vpop.f32.mrf.mxu0  ;;  %v1563_v17 = vpop.f32.mrf.mxu1 }
 0x28d   :  { %v1652_v19 = vpack.c.bf16 %v1562_v14, %v1558_v13  ;;  %v1564_v20 = vadd.f32 %v1563_v17, %v1520_v16  ;;  %v1709_v14 = vrot.slane %v1704_v1, %v3825_v9  ;;  %v3570_v16 = vld [vmem:[#allocation7 + $0x10c] ss:$16 sps:$4 sm:$0xff]  }
 0x28f   :  { %v1710_v22 = vadd.bf16 %v1688_v15, %v1652_v19  ;;  %v1653_v23 = vpack.c.bf16 %v1564_v20, %v1560_v18  ;;  %v3562_v15 = vld [vmem:[#allocation7 + $0x128] ss:$16 sps:$4 sm:$0xff]  }
 0x290   :  { %v3568_v20 = vld [vmem:[#allocation7 + $0x108] ss:$16 sps:$4 sm:$0xff]  }
 0x291   :  { %v1711_v24 = vadd.bf16 %v1695_v21, %v1653_v23  ;;  %v1714_v25 = vmul.bf16 1045249613, %v1710_v22 }
 0x293   :  { %v1715_v26 = vmul.bf16 1045249613, %v1711_v24  ;;  %v3833_v29 = vmax.bf16 %v1714_v25, %v1710_v22 }
 0x295   :  { %v1719_v27 = vmax.bf16 %v1715_v26, %v1711_v24  ;;  %v3571_v24 = vld [vmem:[#allocation7 + $0x2e8] ss:$16 sps:$4 sm:$0xff]   ;;  %v3576_v26 = vld [vmem:[#allocation7 + $0x2cc] ss:$16 sps:$4 sm:$0xff]  }
 0x297   :  { %2522 = vmatprep.mubr.bf16.mxu0 %v1719_v27 }
 0x298   :  { %2523 = vmatmul.mubr.bf16.vlgmr.msra.gmra.mxu0 %v3833_v29 }
 0x299   :  { %2577 = vmatpush1.bf16.msra.mxu0 %v3478_v28  ;;  %2608 = vmatprep.mubr.bf16.mxu0 %v1719_v27  ;;  %v3574_v27 = vld [vmem:[#allocation7 + $0x2c8] ss:$16 sps:$4 sm:$0xff]   ;;  %v3579_v28 = vld [vmem:[#allocation7 + $0x2ac] ss:$16 sps:$4 sm:$0xff]  }
 0x29a   :  { %2578 = vmatprep.subr.bf16.mxu0 %v3486_v30  ;;  %v3577_v30 = vld [vmem:[#allocation7 + $0x2a8] ss:$16 sps:$4 sm:$0xff]  }
 0x29d   :  { %2579 = vmatpush1.bf16.msra.mxu0 %v3484_v31  ;;  %v3582_v31 = vld [vmem:[#allocation7 + $0x28c] ss:$16 sps:$4 sm:$0xff]  }
 0x29e   :  { %2580 = vmatprep.subr.bf16.mxu0 %v3492_v32  ;;  %v3580_v32 = vld [vmem:[#allocation7 + $0x288] ss:$16 sps:$4 sm:$0xff]  }
 0x2a1   :  { %2581 = vmatpush1.bf16.msra.mxu0 %v3490_v33  ;;  %v3585_v33 = vld [vmem:[#allocation7 + $0x26c] ss:$16 sps:$4 sm:$0xff]  }
 0x2a2   :  { %2582 = vmatprep.subr.bf16.mxu0 %v3498_v34  ;;  %v3583_v34 = vld [vmem:[#allocation7 + $0x268] ss:$16 sps:$4 sm:$0xff]  }
 0x2a5   :  { %2583 = vmatpush1.bf16.msra.mxu0 %v3496_v35  ;;  %v3588_v35 = vld [vmem:[#allocation7 + $0x24c] ss:$16 sps:$4 sm:$0xff]  }
 0x2a6   :  { %2584 = vmatprep.subr.bf16.mxu0 %v3504_v36  ;;  %v3586_v36 = vld [vmem:[#allocation7 + $0x248] ss:$16 sps:$4 sm:$0xff]  }
 0x2a9   :  { %2585 = vmatpush1.bf16.msra.mxu0 %v3502_v37  ;;  %v3589_v37 = vld [vmem:[#allocation7 + $0x228] ss:$16 sps:$4 sm:$0xff]  }
 0x2aa   :  { %2586 = vmatprep.subr.bf16.mxu0 %v3510_v38  ;;  %v3594_v38 = vld [vmem:[#allocation7 + $0x20c] ss:$16 sps:$4 sm:$0xff]  }
 0x2ad   :  { %2587 = vmatpush1.bf16.msra.mxu0 %v3508_v39  ;;  %v3592_v39 = vld [vmem:[#allocation7 + $0x208] ss:$16 sps:$4 sm:$0xff]  }
 0x2ae   :  { %2588 = vmatprep.subr.bf16.mxu0 %v3516_v40  ;;  %v3597_v40 = vld [vmem:[#allocation7 + $0x3ec] ss:$16 sps:$4 sm:$0xff]  }
 0x2b1   :  { %2589 = vmatpush1.bf16.msra.mxu0 %v3514_v41  ;;  %v3595_v41 = vld [vmem:[#allocation7 + $0x3e8] ss:$16 sps:$4 sm:$0xff]  }
 0x2b2   :  { %2590 = vmatprep.subr.bf16.mxu0 %v3522_v42  ;;  %v3600_v42 = vld [vmem:[#allocation7 + $0x3cc] ss:$16 sps:$4 sm:$0xff]  }
 0x2b5   :  { %2591 = vmatpush1.bf16.msra.mxu0 %v3520_v43  ;;  %v3598_v43 = vld [vmem:[#allocation7 + $0x3c8] ss:$16 sps:$4 sm:$0xff]  }
 0x2b6   :  { %2592 = vmatprep.subr.bf16.mxu0 %v3528_v44  ;;  %v3603_v44 = vld [vmem:[#allocation7 + $0x3ac] ss:$16 sps:$4 sm:$0xff]  }
 0x2b9   :  { %2593 = vmatpush2.bf16.msra.mxu0 %v3526_v45  ;;  %v3601_v45 = vld [vmem:[#allocation7 + $0x3a8] ss:$16 sps:$4 sm:$0xff]  }
 0x2ba   :  { %2594 = vmatprep.subr.bf16.mxu0 %v3534_v46  ;;  %v3606_v46 = vld [vmem:[#allocation7 + $0x38c] ss:$16 sps:$4 sm:$0xff]  }
 0x2bd   :  { %2595 = vmatpush2.bf16.msra.mxu0 %v3532_v47  ;;  %v3604_v47 = vld [vmem:[#allocation7 + $0x388] ss:$16 sps:$4 sm:$0xff]  }
 0x2be   :  { %2596 = vmatprep.subr.bf16.mxu0 %v3540_v48  ;;  %v3609_v48 = vld [vmem:[#allocation7 + $0x36c] ss:$16 sps:$4 sm:$0xff]  }
 0x2c1   :  { %2597 = vmatpush2.bf16.msra.mxu0 %v3538_v49  ;;  %v3607_v49 = vld [vmem:[#allocation7 + $0x368] ss:$16 sps:$4 sm:$0xff]  }
 0x2c2   :  { %2598 = vmatprep.subr.bf16.mxu0 %v3546_v50  ;;  %v3612_v50 = vld [vmem:[#allocation7 + $0x34c] ss:$16 sps:$4 sm:$0xff]  }
 0x2c5   :  { %2599 = vmatpush2.bf16.msra.mxu0 %v3544_v51  ;;  %v3610_v51 = vld [vmem:[#allocation7 + $0x348] ss:$16 sps:$4 sm:$0xff]  }
 0x2c6   :  { %v1600_v56 = vpop.f32.mrf.mxu0  ;;  %v1643_v59 = vpop.f32.mrf.mxu1  ;;  %2600 = vmatprep.subr.bf16.mxu0 %v3552_v52  ;;  %v3615_v52 = vld [vmem:[#allocation7 + $0x32c] ss:$16 sps:$4 sm:$0xff]  }
 0x2c7   :  { %v1644_v4 = vadd.f32 %v1643_v59, %v1600_v56 }
 0x2c8   :  { %v1602_v62 = vpop.f32.mrf.mxu0  ;;  %v1645_v0 = vpop.f32.mrf.mxu1 }
 0x2c9   :  { %2601 = vmatpush2.bf16.msra.mxu0 %v3550_v54  ;;  %v1646_v11 = vadd.f32 %v1645_v0, %v1602_v62  ;;  %v3618_v54 = vld [vmem:[#allocation7 + $0x30c] ss:$16 sps:$4 sm:$0xff]   ;;  %v2675_v0 = vcombine.high %v3119_v61, %v3119_v61 }
 0x2ca   :  { %v1604_v57 = vpop.f32.mrf.mxu0  ;;  %v1647_v58 = vpop.f32.mrf.mxu1  ;;  %2602 = vmatprep.subr.bf16.mxu0 %v3558_v60 }
 0x2cb   :  { %v1648_v7 = vadd.f32 %v1647_v58, %v1604_v57  ;;  %v2689_v57 = vrot.slane %v2675_v0, %v3816_v2 }
 0x2cc   :  { %v1606_v10 = vpop.f32.mrf.mxu0  ;;  %v1649_v5 = vpop.f32.mrf.mxu1 }
 0x2cd   :  { %v1654_v12 = vpack.c.bf16 %v1648_v7, %v1644_v4  ;;  %v1650_v13 = vadd.f32 %v1649_v5, %v1606_v10  ;;  %2603 = vmatpush2.bf16.msra.mxu0 %v3556_v3 }
 0x2ce   :  { %2604 = vmatprep.subr.bf16.mxu0 %v3564_v6  ;;  %v2682_v6 = vrot.slane %v3119_v61, %v3816_v2 }
 0x2cf   :  { %v1712_v17 = vadd.bf16 %v1702_v8, %v1654_v12  ;;  %v1655_v18 = vpack.c.bf16 %v1650_v13, %v1646_v11  ;;  %v2700_v8 = vpack.i.b16 %v2689_v57, %v2689_v57 }
 0x2d0   :  { %v2693_v11 = vpack.i.b16 %v2682_v6, %v2682_v6 }
 0x2d1   :  { %v1713_v19 = vadd.bf16 %v1709_v14, %v1655_v18  ;;  %2605 = vmatpush2.bf16.msra.mxu0 %v3562_v15  ;;  %v1716_v21 = vmul.bf16 1045249613, %v1712_v17  ;;  %v2705_v14 = vrot.slane %v2700_v8, %v3825_v9 }
 0x2d2   :  { %2606 = vmatprep.subr.bf16.mxu0 %v3570_v16 }
 0x2d3   :  { %v1717_v22 = vmul.bf16 1045249613, %v1713_v19  ;;  %v3842_v25 = vmax.bf16 %v1716_v21, %v1712_v17  ;;  %v2698_v17 = vrot.slane %v2693_v11, %v3825_v9 }
 0x2d5   :  { %2607 = vmatpush2.bf16.msra.mxu0 %v3568_v20  ;;  %v1721_v23 = vmax.bf16 %v1717_v22, %v1713_v19  ;;  %v2690_v19 = vcombine.high %v2682_v6, %v2682_v6  ;;  %v2691_v22 = vcombine.high %v2689_v57, %v2689_v57 }
 0x2d7   :  { %2565 = vmatprep.mubr.bf16.mxu1 %v1721_v23 }
 0x2d8   :  { %2566 = vmatmul.mubr.bf16.vlgmr.msra.gmra.mxu1 %v3842_v25  ;;  %2609 = vmatmul.mubr.bf16.vlgmr.msra.gmra.mxu0 %v3833_v29  ;;  %v3591_v29 = vld [vmem:[#allocation7 + $0x22c] ss:$16 sps:$4 sm:$0xff]  }
 0x2d9   :  { %2620 = vmatpush1.bf16.msra.mxu1 %v3571_v24  ;;  %2651 = vmatprep.mubr.bf16.mxu1 %v1721_v23  ;;  %v2707_v24 = vpack.i.b16 %v2690_v19, %v2690_v19 }
 0x2da   :  { %2621 = vmatprep.subr.bf16.mxu1 %v3576_v26 }
 0x2dd   :  { %2622 = vmatpush1.bf16.msra.mxu1 %v3574_v27 }
 0x2de   :  { %2623 = vmatprep.subr.bf16.mxu1 %v3579_v28  ;;  %v2714_v28 = vpack.i.b16 %v2691_v22, %v2691_v22 }
 0x2e1   :  { %2624 = vmatpush1.bf16.msra.mxu1 %v3577_v30 }
 0x2e2   :  { %2625 = vmatprep.subr.bf16.mxu1 %v3582_v31 }
 0x2e5   :  { %2626 = vmatpush1.bf16.msra.mxu1 %v3580_v32  ;;  %v2748_v32 = vsub.s32 1, %v3810_v63 }
 0x2e6   :  { %2627 = vmatprep.subr.bf16.mxu1 %v3585_v33 }
 0x2e9   :  { %2628 = vmatpush1.bf16.msra.mxu1 %v3583_v34 }
 0x2ea   :  { %2629 = vmatprep.subr.bf16.mxu1 %v3588_v35  ;;  %v2712_v35 = vrot.slane %v2707_v24, %v3825_v9 }
 0x2ed   :  { %2630 = vmatpush1.bf16.msra.mxu1 %v3586_v36 }
 0x2ee   :  { %2631 = vmatprep.subr.bf16.mxu1 %v3591_v29 }
 0x2f1   :  { %2632 = vmatpush1.bf16.msra.mxu1 %v3589_v37 }
 0x2f2   :  { %2633 = vmatprep.subr.bf16.mxu1 %v3594_v38 }
 0x2f5   :  { %2634 = vmatpush1.bf16.msra.mxu1 %v3592_v39 }
 0x2f6   :  { %2635 = vmatprep.subr.bf16.mxu1 %v3597_v40 }
 0x2f9   :  { %2636 = vmatpush2.bf16.msra.mxu1 %v3595_v41  ;;  %v2719_v41 = vrot.slane %v2714_v28, %v3825_v9 }
 0x2fa   :  { %2637 = vmatprep.subr.bf16.mxu1 %v3600_v42  ;;  %v2740_v42 = vld [vmem:[%s3877_s8] sm:$0xf] }
 0x2fd   :  { %2638 = vmatpush2.bf16.msra.mxu1 %v3598_v43 }
 0x2fe   :  { %2639 = vmatprep.subr.bf16.mxu1 %v3603_v44  ;;  %v2749_v44 = vrot.slane %v2740_v42, %v2748_v32 }
 0x301   :  { %2640 = vmatpush2.bf16.msra.mxu1 %v3601_v45 }
 0x302   :  { %2641 = vmatprep.subr.bf16.mxu1 %v3606_v46 }
 0x305   :  { %2642 = vmatpush2.bf16.msra.mxu1 %v3604_v47  ;;  %v2752_v47 = vsub.s32 2, %v3810_v63 }
 0x306   :  { %2643 = vmatprep.subr.bf16.mxu1 %v3609_v48 }
 0x309   :  { %2644 = vmatpush2.bf16.msra.mxu1 %v3607_v49  ;;  %v2745_v49 = vrot.slane %v2740_v42, %v3825_v9 }
 0x30a   :  { %2645 = vmatprep.subr.bf16.mxu1 %v3612_v50  ;;  %v2756_v50 = vsub.s32 3, %v3810_v63 }
 0x30c   :  { %v2757_v61 = vrot.slane %v2740_v42, %v2756_v50 }
 0x30d   :  { %2646 = vmatpush2.bf16.msra.mxu1 %v3610_v51 }
 0x30e   :  { %2647 = vmatprep.subr.bf16.mxu1 %v3615_v52 }
 0x311   :  { %2648 = vmatpush2.bf16.msra.mxu1 %v3613_v53 }
 0x312   :  { %2649 = vmatprep.subr.bf16.mxu1 %v3618_v54 }
 0x315   :  { %2650 = vmatpush2.bf16.msra.mxu1 %v3616_v55 }
 0x318   :  { %2652 = vmatmul.mubr.bf16.vlgmr.msra.gmra.mxu1 %v3842_v25 }
 0x358   :  { %v2524_v59 = vpop.f32.mrf.mxu0 }
 0x35a   :  { %v2526_v62 = vpop.f32.mrf.mxu0 }
 0x35c   :  { %v2528_v3 = vpop.f32.mrf.mxu0 }
 0x35e   :  { %v2530_v4 = vpop.f32.mrf.mxu0 }
 0x398   :  { %v2567_v56 = vpop.f32.mrf.mxu1  ;;  %v2610_v15 = vpop.f32.mrf.mxu0 }
 0x399   :  { %v2568_v12 = vadd.f32 %v2567_v56, %v2524_v59 }
 0x39a   :  { %v2569_v60 = vpop.f32.mrf.mxu1  ;;  %v2612_v20 = vpop.f32.mrf.mxu0 }
 0x39b   :  { %v2570_v10 = vadd.f32 %v2569_v60, %v2526_v62  ;;  %v2753_v60 = vrot.slane %v2740_v42, %v2752_v47 }
 0x39c   :  { %v2571_v1 = vpop.f32.mrf.mxu1  ;;  %v2614_v26 = vpop.f32.mrf.mxu0 }
 0x39d   :  { %v2572_v5 = vadd.f32 %v2571_v1, %v2528_v3 }
 0x39e   :  { %v2573_v58 = vpop.f32.mrf.mxu1  ;;  %v2616_v29 = vpop.f32.mrf.mxu0 }
 0x39f   :  { %v2574_v7 = vadd.f32 %v2573_v58, %v2530_v4  ;;  %v2662_v16 = vpack.c.bf16 %v2572_v5, %v2568_v12 }
 0x3a1   :  { %v2663_v13 = vpack.c.bf16 %v2574_v7, %v2570_v10  ;;  %v2720_v21 = vadd.bf16 %v2698_v17, %v2662_v16 }
 0x3a3   :  { %v2721_v18 = vadd.bf16 %v2705_v14, %v2663_v13  ;;  %v2724_v25 = vmul.bf16 1045249613, %v2720_v21 }
 0x3a5   :  { %v2725_v2 = vmul.bf16 1045249613, %v2721_v18  ;;  %v2728_v36 = vmax.bf16 %v2724_v25, %v2720_v21 }
 0x3a7   :  { %v2729_v30 = vmax.bf16 %v2725_v2, %v2721_v18  ;;  %v2732_v48 = vunpack.c.l.bf16 %v2728_v36  ;;  %v2736_v54 = vunpack.c.h.bf16 %v2728_v36 }
 0x3a9   :  { %v2733_v43 = vunpack.c.l.bf16 %v2729_v30  ;;  %v2737_v51 = vunpack.c.h.bf16 %v2729_v30  ;;  %v2762_v62 = vmul.f32 %v2745_v49, %v2732_v48  ;;  %v2766_v6 = vmul.f32 %v2745_v49, %v2736_v54 }
 0x3ab   :  { %v2763_v55 = vmul.f32 %v2749_v44, %v2733_v43  ;;  %v2767_v57 = vmul.f32 %v2749_v44, %v2737_v51 }
 0x3ad   :  { %v2770_v58 = vadd.f32 %v2763_v55, %v2762_v62  ;;  %v2775_v5 = vadd.f32 %v2767_v57, %v2766_v6 }
 0x3d8   :  { %v2653_v23 = vpop.f32.mrf.mxu1 }
 0x3d9   :  { %v2654_v33 = vadd.f32 %v2653_v23, %v2610_v15 }
 0x3da   :  { %v2655_v27 = vpop.f32.mrf.mxu1 }
 0x3db   :  { %v2656_v38 = vadd.f32 %v2655_v27, %v2612_v20 }
 0x3dc   :  { %v2657_v31 = vpop.f32.mrf.mxu1 }
 0x3dd   :  { %v2658_v34 = vadd.f32 %v2657_v31, %v2614_v26 }
 0x3de   :  { %v2659_v37 = vpop.f32.mrf.mxu1 }
 0x3df   :  { %v2664_v39 = vpack.c.bf16 %v2658_v34, %v2654_v33  ;;  %v2660_v40 = vadd.f32 %v2659_v37, %v2616_v29 }
 0x3e1   :  { %v2722_v45 = vadd.bf16 %v2712_v35, %v2664_v39  ;;  %v2665_v46 = vpack.c.bf16 %v2660_v40, %v2656_v38 }
 0x3e3   :  { %v2726_v52 = vmul.bf16 1045249613, %v2722_v45  ;;  %v2723_v53 = vadd.bf16 %v2719_v41, %v2665_v46 }
 0x3e5   :  { %v2730_v56 = vmax.bf16 %v2726_v52, %v2722_v45  ;;  %v2727_v59 = vmul.bf16 1045249613, %v2723_v53 }
 0x3e7   :  { %v2731_v0 = vmax.bf16 %v2727_v59, %v2723_v53  ;;  %v2734_v1 = vunpack.c.l.bf16 %v2730_v56  ;;  %v2738_v3 = vunpack.c.h.bf16 %v2730_v56 }
 0x3e9   :  { %v2735_v4 = vunpack.c.l.bf16 %v2731_v0  ;;  %v2764_v9 = vmul.f32 %v2753_v60, %v2734_v1  ;;  %v2739_v7 = vunpack.c.h.bf16 %v2731_v0  ;;  %v2768_v63 = vmul.f32 %v2753_v60, %v2738_v3 }
 0x3eb   :  { %v2765_v8 = vmul.f32 %v2757_v61, %v2735_v4  ;;  %v2771_v10 = vadd.f32 %v2770_v58, %v2764_v9  ;;  %v2769_v12 = vmul.f32 %v2757_v61, %v2739_v7  ;;  %v2776_v13 = vadd.f32 %v2775_v5, %v2768_v63 }
 0x3ed   :  { %v2772_v11 = vadd.f32 %v2771_v10, %v2765_v8  ;;  %v2777_v14 = vadd.f32 %v2776_v13, %v2769_v12 }
 0x3ef   :  { %2773 = vadd.xlane.f32.xlu1 %v2772_v11 }
 0x3f3   :  { %2778 = vadd.xlane.f32.xlu1 %v2777_v14 }
 0x478   :  { %v2774_v15 = vpop.xlane.xlu1 %2773 }
 0x479   :  { %2781 = vst.msk [vmem:[%s3878_s9] sm:$0xff] %vm2780_vm3, %v2774_v15 }
 0x47c   :  { %v2779_v16 = vpop.xlane.xlu1 %2778 }
 0x47d   :  { %2782 = vst.msk [vmem:[%s3878_s9 + $0x8] sm:$0xff] %vm2780_vm3, %v2779_v16 }
 0x47e   :  { %2787 = vsyncpa [#allocation3], 1 }
 0x47f   :  { %2788 = vsyncpa [#allocation5], 1 }
 0x480   :  { %2789 = vsyncpa [#allocation8], 1 }

</bundles_post_ra>
